<compile_context>
chip_gen: v5e
topology: v5e:2x2
jax: 0.10.0
libtpu: 0.0.40
codegen_flags: <defaults>
</compile_context>

<pallas_src>
import functools

import jax
import jax.numpy as jnp
from jax.experimental import pallas as pl
from jax.experimental.pallas import tpu as pltpu


def critic_kernel(x_ref, w1_ref, b1_ref, w2_ref, b2_ref, w3_ref, b3_ref, o_ref):
    # Layer 1 (f32, K = d_in is tiny): [fc1, d_in] @ [d_in, TB] -> [fc1, TB].
    h1 = jnp.dot(w1_ref[...], x_ref[...], preferred_element_type=jnp.float32)
    h1 = jnp.maximum(h1 + b1_ref[...], 0.0)                 # bias + ReLU (VPU, f32)
    # Layer 2 (bf16 MXU operands, f32 accumulation): [fc2, fc1] @ [fc1, TB].
    h2 = jnp.dot(w2_ref[...], h1.astype(jnp.bfloat16),
                 preferred_element_type=jnp.float32)
    h2 = jnp.maximum(h2 + b2_ref[...], 0.0)
    # Layer 3: 256 -> 1 as a VPU multiply + sublane reduction -> lane-dense [1, TB].
    v = jnp.sum(h2 * w3_ref[...], axis=0, keepdims=True) + b3_ref[0, 0]
    o_ref[...] = v.astype(o_ref.dtype)                      # [1, TB]


@functools.partial(jax.jit, static_argnames=("tile_b",))
def critic_forward(state, w1, b1, w2, b2, w3, b3, *, tile_b=None):
    """Fused critic MLP forward.

    state: [B, D_in] f32 -> value: [B, 1] f32.
    Weights are in PyTorch Linear layout: w [out, in], b [out].
    """
    B, d_in = state.shape
    fc1 = w1.shape[0]
    fc2 = w2.shape[0]

    # Batch tile: a single grid step for up to 4096 rows (amortizes the
    # ~0.35us/step pipeline overhead); always a multiple of 256 so tiles feed
    # the 2x256 MXU (and 128-lane vregs) without partial passes.
    if tile_b is None:
        tile_b = min(4096, 256 * pl.cdiv(B, 256))
    assert tile_b % 256 == 0, "tile_b must be a multiple of 256"

    n_tiles = pl.cdiv(B, tile_b)
    b_pad = n_tiles * tile_b
    d_pad = 8 * pl.cdiv(d_in, 8)          # f32 sublane pack

    # Feature-major input: pad batch/features with zeros, then transpose so the
    # batch dimension lands on lanes.  Zero feature padding is exact (it only
    # multiplies zero weight columns).
    x = state
    if b_pad != B or d_pad != d_in:
        x = jnp.pad(x, ((0, b_pad - B), (0, d_pad - d_in)))
    x_t = x.astype(jnp.float32).T                             # [d_pad, b_pad]

    w1_p = w1.astype(jnp.float32)                             # [fc1, d_in]
    if d_pad != d_in:
        w1_p = jnp.pad(w1_p, ((0, 0), (0, d_pad - d_in)))     # [fc1, d_pad]
    b1_col = b1.reshape(fc1, 1).astype(jnp.float32)
    w2_bf16 = w2.astype(jnp.bfloat16)                         # [fc2, fc1]
    b2_col = b2.reshape(fc2, 1).astype(jnp.float32)
    w3_col = w3.reshape(fc2, 1).astype(jnp.float32)           # VPU path
    b3_2d = b3.reshape(1, 1).astype(jnp.float32)              # SMEM scalar

    # NOTE: constant-index_map weight specs could be pinned single-buffered
    # (pipeline_mode=pl.Buffered(1)) if a Mosaic dump shows them double
    # buffered; the ~66 KB saving is irrelevant at these tile sizes.
    out = pl.pallas_call(
        critic_kernel,
        out_shape=jax.ShapeDtypeStruct((1, b_pad), jnp.float32),
        grid_spec=pltpu.PrefetchScalarGridSpec(
            num_scalar_prefetch=0,
            grid=(n_tiles,),
            in_specs=[
                pl.BlockSpec((d_pad, tile_b), lambda i: (0, i)),     # x: streamed, lane-dense
                pl.BlockSpec((fc1, d_pad), lambda i: (0, 0)),        # W1: resident (f32)
                pl.BlockSpec((fc1, 1), lambda i: (0, 0)),            # b1: resident
                pl.BlockSpec((fc2, fc1), lambda i: (0, 0)),          # W2: resident (bf16)
                pl.BlockSpec((fc2, 1), lambda i: (0, 0)),            # b2: resident
                pl.BlockSpec((fc2, 1), lambda i: (0, 0)),            # W3 col: resident
                pl.BlockSpec(memory_space=pltpu.MemorySpace.SMEM),   # b3: SMEM scalar
            ],
            out_specs=pl.BlockSpec((1, tile_b), lambda i: (0, i)),   # lane-dense output
        ),
        compiler_params=pltpu.CompilerParams(
            dimension_semantics=("parallel",),
        ),
    )(x_t, w1_p, b1_col, w2_bf16, b2_col, w3_col, b3_2d)

    # [1, b_pad] -> [b_pad, 1] is a free layout fix-up in the wrapper.
    return out.reshape(b_pad, 1)[:B]


def init_params(key, input_dims, fc1_dims=256, fc2_dims=256):
    """Deterministic PyTorch-Linear-style init (uniform +-1/sqrt(fan_in)),
    stored in PyTorch layout: w [out, in], b [out]."""
    ks = jax.random.split(key, 6)

    def linear(kw, kb, fan_in, fan_out):
        bound = 1.0 / jnp.sqrt(fan_in)
        w = jax.random.uniform(kw, (fan_out, fan_in), jnp.float32, -bound, bound)
        b = jax.random.uniform(kb, (fan_out,), jnp.float32, -bound, bound)
        return w, b

    w1, b1 = linear(ks[0], ks[1], input_dims, fc1_dims)
    w2, b2 = linear(ks[2], ks[3], fc1_dims, fc2_dims)
    w3, b3 = linear(ks[4], ks[5], fc2_dims, 1)
    return w1, b1, w2, b2, w3, b3


if __name__ == "__main__":
    key = jax.random.PRNGKey(0)
    k_params, k_state = jax.random.split(key)

    # NOTE: at tiny per-call batches a Pallas launch is pure overhead; in a
    # real PPO rollout, batch many environment states into a single call.
    B = 37            # deliberately not a tile multiple: exercises pad + slice
    INPUT_DIMS = 8    # observation dimensionality (input_dims of the module)

    params = init_params(k_params, INPUT_DIMS)
    state = jax.random.normal(k_state, (B, INPUT_DIMS), jnp.float32)

    val = critic_forward(state, *params)
    val = jax.block_until_ready(val)

    # Pure-JAX f32 reference (PyTorch semantics).  Layer 2 of the kernel uses
    # bf16 matmul operands with f32 accumulation, hence loose tolerances.
    w1, b1, w2, b2, w3, b3 = params
    h1 = jnp.maximum(state @ w1.T + b1, 0.0)
    h2 = jnp.maximum(h1 @ w2.T + b2, 0.0)
    ref = h2 @ w3.T + b3
    assert val.shape == (B, 1), val.shape
    max_err = float(jnp.max(jnp.abs(val - ref)))
    assert jnp.allclose(val, ref, atol=2e-2, rtol=2e-2), f"mismatch: {max_err}"

    print("KERNEL_OK")
</pallas_src>

<mosaic_0001>
module attributes {stable_mosaic.version = 11 : i64} {
  func.func @critic_kernel(%arg0: i32, %arg1: memref<8x256xf32, #tpu.memory_space<vmem>>, %arg2: memref<256x8xf32, #tpu.memory_space<vmem>>, %arg3: memref<256x1xf32, #tpu.memory_space<vmem>>, %arg4: memref<256x256xbf16, #tpu.memory_space<vmem>>, %arg5: memref<256x1xf32, #tpu.memory_space<vmem>>, %arg6: memref<256x1xf32, #tpu.memory_space<vmem>>, %arg7: memref<1x1xf32, #tpu.memory_space<smem>>, %arg8: memref<1x256xf32, #tpu.memory_space<vmem>>) attributes {dimension_semantics = [#tpu.dimension_semantics<parallel>], iteration_bounds = array<i64: 1>, scalar_prefetch = 0 : i64, scratch_operands = 0 : i64, tpu.core_type = #tpu.core_type<tc>, window_params = [{transform_indices = @transform_0, window_bounds = array<i64: 8, 256>}, {pipeline_mode = #tpu.pipeline_mode<synchronous>, transform_indices = @transform_1, window_bounds = array<i64: 256, 8>}, {pipeline_mode = #tpu.pipeline_mode<synchronous>, transform_indices = @transform_2, window_bounds = array<i64: 256, 1>}, {pipeline_mode = #tpu.pipeline_mode<synchronous>, transform_indices = @transform_3, window_bounds = array<i64: 256, 256>}, {pipeline_mode = #tpu.pipeline_mode<synchronous>, transform_indices = @transform_4, window_bounds = array<i64: 256, 1>}, {pipeline_mode = #tpu.pipeline_mode<synchronous>, transform_indices = @transform_5, window_bounds = array<i64: 256, 1>}, {transform_indices = @transform_6, window_bounds = array<i64: 1, 1>}, {transform_indices = @transform_7, window_bounds = array<i64: 1, 256>}]} {
    %c0 = arith.constant 0 : index
    %c0_0 = arith.constant 0 : index
    %0 = vector.load %arg2[%c0, %c0_0] : memref<256x8xf32, #tpu.memory_space<vmem>>, vector<256x8xf32>
    %c0_1 = arith.constant 0 : index
    %c0_2 = arith.constant 0 : index
    %1 = vector.load %arg1[%c0_1, %c0_2] : memref<8x256xf32, #tpu.memory_space<vmem>>, vector<8x256xf32>
    %cst = arith.constant dense<0.000000e+00> : vector<256x256xf32>
    %2 = tpu.matmul %0, %1, %cst {dimension_numbers = #tpu.dot_dimension_numbers<[1], [0], [0], [1], [0, 0, 1, 1], [], []>} : vector<256x8xf32>, vector<8x256xf32>, vector<256x256xf32> -> vector<256x256xf32>
    %c0_3 = arith.constant 0 : index
    %c0_4 = arith.constant 0 : index
    %3 = vector.load %arg3[%c0_3, %c0_4] : memref<256x1xf32, #tpu.memory_space<vmem>>, vector<256x1xf32>
    %4 = vector.broadcast %3 : vector<256x1xf32> to vector<256x256xf32>
    %5 = arith.addf %2, %4 : vector<256x256xf32>
    %cst_5 = arith.constant 0.000000e+00 : f32
    %6 = vector.broadcast %cst_5 : f32 to vector<256x256xf32>
    %7 = arith.maximumf %5, %6 : vector<256x256xf32>
    %c0_6 = arith.constant 0 : index
    %c0_7 = arith.constant 0 : index
    %8 = vector.load %arg4[%c0_6, %c0_7] : memref<256x256xbf16, #tpu.memory_space<vmem>>, vector<256x256xbf16>
    %9 = arith.truncf %7 : vector<256x256xf32> to vector<256x256xbf16>
    %cst_8 = arith.constant dense<0.000000e+00> : vector<256x256xf32>
    %10 = tpu.matmul %8, %9, %cst_8 {dimension_numbers = #tpu.dot_dimension_numbers<[1], [0], [0], [1], [0, 0, 1, 1], [], []>} : vector<256x256xbf16>, vector<256x256xbf16>, vector<256x256xf32> -> vector<256x256xf32>
    %c0_9 = arith.constant 0 : index
    %c0_10 = arith.constant 0 : index
    %11 = vector.load %arg5[%c0_9, %c0_10] : memref<256x1xf32, #tpu.memory_space<vmem>>, vector<256x1xf32>
    %12 = vector.broadcast %11 : vector<256x1xf32> to vector<256x256xf32>
    %13 = arith.addf %10, %12 : vector<256x256xf32>
    %cst_11 = arith.constant 0.000000e+00 : f32
    %14 = vector.broadcast %cst_11 : f32 to vector<256x256xf32>
    %15 = arith.maximumf %13, %14 : vector<256x256xf32>
    %c0_12 = arith.constant 0 : index
    %c0_13 = arith.constant 0 : index
    %16 = vector.load %arg6[%c0_12, %c0_13] : memref<256x1xf32, #tpu.memory_space<vmem>>, vector<256x1xf32>
    %17 = vector.broadcast %16 : vector<256x1xf32> to vector<256x256xf32>
    %18 = arith.mulf %15, %17 : vector<256x256xf32>
    %cst_14 = arith.constant dense<0.000000e+00> : vector<256xf32>
    %19 = vector.multi_reduction <add>, %18, %cst_14 [0] : vector<256x256xf32> to vector<256xf32>
    %20 = vector.shape_cast %19 : vector<256xf32> to vector<1x256xf32>
    %c0_15 = arith.constant 0 : index
    %c0_16 = arith.constant 0 : index
    %21 = memref.load %arg7[%c0_15, %c0_16] : memref<1x1xf32, #tpu.memory_space<smem>>
    %22 = vector.broadcast %21 : f32 to vector<1x256xf32>
    %23 = arith.addf %20, %22 : vector<1x256xf32>
    %c0_17 = arith.constant 0 : index
    %c0_18 = arith.constant 0 : index
    %24 = vector.load %arg8[%c0_17, %c0_18] : memref<1x256xf32, #tpu.memory_space<vmem>>, vector<1x256xf32>
    tpu.vector_store %arg8[%c0_17, %c0_18], %23 {strides = array<i32>} : memref<1x256xf32, #tpu.memory_space<vmem>>, vector<1x256xf32>,
    return
  }
  func.func @transform_0(%arg0: i32) -> (i32, i32) {
    %c0_i32 = arith.constant 0 : i32
    %c0_i32_0 = arith.constant 0 : i32
    return %c0_i32, %arg0 : i32, i32
  }
  func.func @transform_1(%arg0: i32) -> (i32, i32) {
    %c0_i32 = arith.constant 0 : i32
    %c0_i32_0 = arith.constant 0 : i32
    %c0_i32_1 = arith.constant 0 : i32
    return %c0_i32, %c0_i32_0 : i32, i32
  }
  func.func @transform_2(%arg0: i32) -> (i32, i32) {
    %c0_i32 = arith.constant 0 : i32
    %c0_i32_0 = arith.constant 0 : i32
    %c0_i32_1 = arith.constant 0 : i32
    return %c0_i32, %c0_i32_0 : i32, i32
  }
  func.func @transform_3(%arg0: i32) -> (i32, i32) {
    %c0_i32 = arith.constant 0 : i32
    %c0_i32_0 = arith.constant 0 : i32
    %c0_i32_1 = arith.constant 0 : i32
    return %c0_i32, %c0_i32_0 : i32, i32
  }
  func.func @transform_4(%arg0: i32) -> (i32, i32) {
    %c0_i32 = arith.constant 0 : i32
    %c0_i32_0 = arith.constant 0 : i32
    %c0_i32_1 = arith.constant 0 : i32
    return %c0_i32, %c0_i32_0 : i32, i32
  }
  func.func @transform_5(%arg0: i32) -> (i32, i32) {
    %c0_i32 = arith.constant 0 : i32
    %c0_i32_0 = arith.constant 0 : i32
    %c0_i32_1 = arith.constant 0 : i32
    return %c0_i32, %c0_i32_0 : i32, i32
  }
  func.func @transform_6(%arg0: i32) -> (i32, i32) {
    %c0_i32 = arith.constant 0 : i32
    %c0_i32_0 = arith.constant 0 : i32
    %c0_i32_1 = arith.constant 0 : i32
    return %c0_i32, %c0_i32_0 : i32, i32
  }
  func.func @transform_7(%arg0: i32) -> (i32, i32) {
    %c0_i32 = arith.constant 0 : i32
    %c0_i32_0 = arith.constant 0 : i32
    return %c0_i32, %arg0 : i32, i32
  }
}

</mosaic_0001>

<bundles_post_ra>
// kernel: critic_forward.1
= control target key start
LH: loop header
LB: loop body
LE: loop exit
PB: predicated region body
PF: predicated region fallthrough
CT: control target
= control target key end

     0   :  { %v2055_v0 = vmov 0   ;;  %vm253_vm0 = vcmask 64512   ;;  %vm1813_vm1 = vcmask 1040384   ;;  %s3161_s2 = inlined_call_operand.vmem [shape: f32[256,1], index: 2, kind: input, shape index: {}]   ;;  %s3162_s0 = inlined_call_operand.vmem [shape: f32[8,256], index: 0, kind: input, shape index: {}]   ;;  %s3163_s1 = inlined_call_operand.vmem [shape: f32[256,8], index: 1, kind: input, shape index: {}]   ;;  %s3164_s4 = inlined_call_operand.vmem [shape: f32[256,1], index: 4, kind: input, shape index: {}]   ;;  %s3165_s5 = inlined_call_operand.vmem [shape: f32[256,1], index: 5, kind: input, shape index: {}]   ;;  %s3166_s3 = inlined_call_operand.vmem [shape: bf16[256,256], index: 3, kind: input, shape index: {}]   ;;  %s3167_s6 = inlined_call_operand.<no memory space> [shape: f32[1,1], index: 6, kind: input, shape index: {}]   ;;  %s3168_s7 = inlined_call_operand.vmem [shape: f32[1,256], index: 7, kind: output, shape index: {}]  }
   0x1   :  { %2054 = vset.pattern.permute.xlu2 %v2055_v0  ;;  %2053 = vset.pattern.permute.xlu1 %v2055_v0  ;;  %v65_v1 = vld [vmem:[%s3161_s2 + $0x20] sm:$0xff]  ;;  %v63_v2 = vld [vmem:[%s3161_s2 + $0x10] sm:$0xff]  ;;  %v60_v5 = vld [vmem:[%s3162_s0 + $0x8] sm:$0xff] }
   0x2   :  { %v61_v3 = vld [vmem:[%s3161_s2] sm:$0xff]  ;;  %2052 = vset.pattern.permute.xlu0 %v2055_v0  ;;  %115 = vperm.xlu2 %2054, %v65_v1   ;;  %v44_v7 = vld [vmem:[%s3163_s1 + $0x88] sm:$0xff]  ;;  %v64_v10 = vld [vmem:[%s3161_s2 + $0x18] sm:$0xff] }
   0x3   :  { %v59_v4 = vld [vmem:[%s3162_s0] sm:$0xff]  ;;  %105 = vperm.xlu1 %2053, %v63_v2   ;;  %95 = vperm.xlu0 %2052, %v61_v3   ;;  %v66_v9 = vld [vmem:[%s3161_s2 + $0x28] sm:$0xff]  ;;  %v45_v13 = vld [vmem:[%s3163_s1 + $0x90] sm:$0xff] }
   0x4   :  { %v27_v6 = vld [vmem:[%s3163_s1] sm:$0xff]  ;;  %365 = vmatpush.msra.mxu0 %v59_v4  ;;  %2049 = vmatpush.msra.mxu2 %v59_v4  ;;  %v62_v11 = vld [vmem:[%s3161_s2 + $0x8] sm:$0xff]  ;;  %v68_v15 = vld [vmem:[%s3161_s2 + $0x38] sm:$0xff] }
   0x5   :  { %v2120_v8 = vld [vmem:[%s3163_s1 + $0x80] sm:$0xff]  ;;  %478 = vmatpush.msra.mxu1 %v60_v5  ;;  %2050 = vmatpush.msra.mxu3 %v60_v5  ;;  %v28_v12 = vld [vmem:[%s3163_s1 + $0x8] sm:$0xff]  ;;  %v67_v16 = vld [vmem:[%s3161_s2 + $0x30] sm:$0xff] }
   0x6   :  { %1825 = vmatmul.msk.f32.vlgmr.msra.gmra.mxu0 %vm253_vm0, %v27_v6  ;;  %1842 = vmatmul.msk.f32.vlgmr.msra.gmra.mxu2 %vm253_vm0, %v44_v7  ;;  %v69_v14 = vld [vmem:[%s3161_s2 + $0x40] sm:$0xff]  ;;  %v29_v17 = vld [vmem:[%s3163_s1 + $0x10] sm:$0xff]  ;;  %v46_v18 = vld [vmem:[%s3163_s1 + $0x98] sm:$0xff] }
   0x7   :  { %1857 = vmatmul.msk.f32.vlgmr.msra.gmra.mxu1 %vm253_vm0, %v27_v6  ;;  %1873 = vmatmul.msk.f32.vlgmr.msra.gmra.mxu3 %vm253_vm0, %v2120_v8  ;;  %v72_v19 = vld [vmem:[%s3161_s2 + $0x58] sm:$0xff]  ;;  %v71_v20 = vld [vmem:[%s3161_s2 + $0x50] sm:$0xff]  ;;  %v70_v21 = vld [vmem:[%s3161_s2 + $0x48] sm:$0xff] }
   0x8   :  { %v30_v22 = vld [vmem:[%s3163_s1 + $0x18] sm:$0xff]  ;;  %v47_v23 = vld [vmem:[%s3163_s1 + $0xa0] sm:$0xff]  ;;  %v75_v24 = vld [vmem:[%s3161_s2 + $0x70] sm:$0xff] }
   0x9   :  { %v74_v25 = vld [vmem:[%s3161_s2 + $0x68] sm:$0xff]  ;;  %v73_v26 = vld [vmem:[%s3161_s2 + $0x60] sm:$0xff]  ;;  %v91_v29 = vld [vmem:[%s3161_s2 + $0xf0] sm:$0xff] }
   0xa   :  { %120 = vperm.xlu2 %2054, %v66_v9   ;;  %v31_v27 = vld [vmem:[%s3163_s1 + $0x20] sm:$0xff]  ;;  %v48_v28 = vld [vmem:[%s3163_s1 + $0xa8] sm:$0xff]  ;;  %v76_v31 = vld [vmem:[%s3161_s2 + $0x78] sm:$0xff] }
   0xb   :  { %110 = vperm.xlu1 %2053, %v64_v10   ;;  %100 = vperm.xlu0 %2052, %v62_v11   ;;  %v77_v30 = vld [vmem:[%s3161_s2 + $0x80] sm:$0xff]  ;;  %v32_v32 = vld [vmem:[%s3163_s1 + $0x28] sm:$0xff]  ;;  %v49_v33 = vld [vmem:[%s3163_s1 + $0xb0] sm:$0xff] }
   0xc   :  { %v90_v34 = vld [vmem:[%s3161_s2 + $0xe8] sm:$0xff]  ;;  %v89_v35 = vld [vmem:[%s3161_s2 + $0xe0] sm:$0xff]  ;;  %v92_v36 = vld [vmem:[%s3161_s2 + $0xf8] sm:$0xff] }
   0xd   :  { %v33_v37 = vld [vmem:[%s3163_s1 + $0x30] sm:$0xff]  ;;  %v50_v38 = vld [vmem:[%s3163_s1 + $0xb8] sm:$0xff]  ;;  %v85_v39 = vld [vmem:[%s3161_s2 + $0xc0] sm:$0xff] }
   0xe   :  { %1826 = vmatmul.msk.f32.gmra.mxu0 %vm253_vm0, %v28_v12  ;;  %1843 = vmatmul.msk.f32.gmra.mxu2 %vm253_vm0, %v45_v13  ;;  %v88_v40 = vld [vmem:[%s3161_s2 + $0xd8] sm:$0xff]  ;;  %v87_v41 = vld [vmem:[%s3161_s2 + $0xd0] sm:$0xff]  ;;  %v51_v43 = vld [vmem:[%s3163_s1 + $0xc0] sm:$0xff] }
   0xf   :  { %1858 = vmatmul.msk.f32.gmra.mxu1 %vm253_vm0, %v28_v12  ;;  %1874 = vmatmul.msk.f32.gmra.mxu3 %vm253_vm0, %v44_v7  ;;  %v34_v42 = vld [vmem:[%s3163_s1 + $0x38] sm:$0xff]  ;;  %v83_v45 = vld [vmem:[%s3161_s2 + $0xb0] sm:$0xff]  ;;  %v86_v46 = vld [vmem:[%s3161_s2 + $0xc8] sm:$0xff] }
  0x10   :  { %v84_v44 = vld [vmem:[%s3161_s2 + $0xb8] sm:$0xff]  ;;  %v35_v47 = vld [vmem:[%s3163_s1 + $0x40] sm:$0xff]  ;;  %v52_v48 = vld [vmem:[%s3163_s1 + $0xc8] sm:$0xff] }
  0x11   :  { %v79_v49 = vld [vmem:[%s3161_s2 + $0x90] sm:$0xff]  ;;  %v82_v50 = vld [vmem:[%s3161_s2 + $0xa8] sm:$0xff]  ;;  %v81_v51 = vld [vmem:[%s3161_s2 + $0xa0] sm:$0xff] }
  0x12   :  { %135 = vperm.xlu2 %2054, %v69_v14   ;;  %v36_v52 = vld [vmem:[%s3163_s1 + $0x48] sm:$0xff]  ;;  %v53_v53 = vld [vmem:[%s3163_s1 + $0xd0] sm:$0xff]  ;;  %v704_v54 = vld [vmem:[%s3164_s4] sm:$0xff] }
  0x13   :  { %130 = vperm.xlu1 %2053, %v68_v15   ;;  %125 = vperm.xlu0 %2052, %v67_v16   ;;  %v78_v55 = vld [vmem:[%s3161_s2 + $0x88] sm:$0xff]  ;;  %v80_v56 = vld [vmem:[%s3161_s2 + $0x98] sm:$0xff]  ;;  %v37_v57 = vld [vmem:[%s3163_s1 + $0x50] sm:$0xff] }
  0x14   :  { %v54_v58 = vld [vmem:[%s3163_s1 + $0xd8] sm:$0xff]  ;;  %v706_v60 = vld [vmem:[%s3164_s4 + $0x10] sm:$0xff]  ;;  %v705_v61 = vld [vmem:[%s3164_s4 + $0x8] sm:$0xff] }
  0x15   :  { %v707_v59 = vld [vmem:[%s3164_s4 + $0x18] sm:$0xff]  ;;  %v55_v63 = vld [vmem:[%s3163_s1 + $0xe0] sm:$0xff]  ;;  %v710_v0 = vld [vmem:[%s3164_s4 + $0x30] sm:$0xff] }
  0x16   :  { %1827 = vmatmul.msk.f32.gmra.mxu0 %vm253_vm0, %v29_v17  ;;  %1844 = vmatmul.msk.f32.gmra.mxu2 %vm253_vm0, %v46_v18  ;;  %v38_v62 = vld [vmem:[%s3163_s1 + $0x58] sm:$0xff]  ;;  %v709_v1 = vld [vmem:[%s3164_s4 + $0x28] sm:$0xff]  ;;  %v708_v2 = vld [vmem:[%s3164_s4 + $0x20] sm:$0xff] }
  0x17   :  { %1859 = vmatmul.msk.f32.gmra.mxu1 %vm253_vm0, %v29_v17  ;;  %1875 = vmatmul.msk.f32.gmra.mxu3 %vm253_vm0, %v45_v13  ;;  %v39_v3 = vld [vmem:[%s3163_s1 + $0x60] sm:$0xff]  ;;  %v56_v4 = vld [vmem:[%s3163_s1 + $0xe8] sm:$0xff]  ;;  %v711_v7 = vld [vmem:[%s3164_s4 + $0x38] sm:$0xff] }
  0x18   :  { %v713_v5 = vld [vmem:[%s3164_s4 + $0x48] sm:$0xff]  ;;  %v712_v6 = vld [vmem:[%s3164_s4 + $0x40] sm:$0xff]  ;;  %v57_v10 = vld [vmem:[%s3163_s1 + $0xf0] sm:$0xff] }
  0x19   :  { %v40_v9 = vld [vmem:[%s3163_s1 + $0x68] sm:$0xff]  ;;  %v716_v11 = vld [vmem:[%s3164_s4 + $0x60] sm:$0xff]  ;;  %v715_v12 = vld [vmem:[%s3164_s4 + $0x58] sm:$0xff] }
  0x1a   :  { %150 = vperm.xlu2 %2054, %v72_v19   ;;  %v714_v13 = vld [vmem:[%s3164_s4 + $0x50] sm:$0xff]  ;;  %v58_v15 = vld [vmem:[%s3163_s1 + $0xf8] sm:$0xff] }
  0x1b   :  { %145 = vperm.xlu1 %2053, %v71_v20   ;;  %140 = vperm.xlu0 %2052, %v70_v21   ;;  %v41_v14 = vld [vmem:[%s3163_s1 + $0x70] sm:$0xff]  ;;  %v719_v16 = vld [vmem:[%s3164_s4 + $0x78] sm:$0xff]  ;;  %v721_v21 = vld [vmem:[%s3164_s4 + $0x88] sm:$0xff] }
  0x1c   :  { %v718_v17 = vld [vmem:[%s3164_s4 + $0x70] sm:$0xff]  ;;  %v42_v19 = vld [vmem:[%s3163_s1 + $0x78] sm:$0xff] }
  0x1d   :  { %v722_v20 = vld [vmem:[%s3164_s4 + $0x90] sm:$0xff] }
  0x1e   :  { %1828 = vmatmul.msk.f32.gmra.mxu0 %vm253_vm0, %v30_v22  ;;  %1845 = vmatmul.msk.f32.gmra.mxu2 %vm253_vm0, %v47_v23 }
  0x1f   :  { %1860 = vmatmul.msk.f32.gmra.mxu1 %vm253_vm0, %v30_v22  ;;  %1876 = vmatmul.msk.f32.gmra.mxu3 %vm253_vm0, %v46_v18  ;;  %v717_v18 = vld [vmem:[%s3164_s4 + $0x68] sm:$0xff]  ;;  %v720_v22 = vld [vmem:[%s3164_s4 + $0x80] sm:$0xff] }
  0x22   :  { %165 = vperm.xlu2 %2054, %v75_v24  }
  0x23   :  { %160 = vperm.xlu1 %2053, %v74_v25   ;;  %155 = vperm.xlu0 %2052, %v73_v26  }
  0x26   :  { %1829 = vmatmul.msk.f32.gmra.mxu0 %vm253_vm0, %v31_v27  ;;  %1846 = vmatmul.msk.f32.gmra.mxu2 %vm253_vm0, %v48_v28 }
  0x27   :  { %1861 = vmatmul.msk.f32.gmra.mxu1 %vm253_vm0, %v31_v27  ;;  %1877 = vmatmul.msk.f32.gmra.mxu3 %vm253_vm0, %v47_v23  ;;  %v725_v27 = vld [vmem:[%s3164_s4 + $0xa8] sm:$0xff] }
  0x2a   :  { %245 = vperm.xlu2 %2054, %v91_v29   ;;  %v723_v29 = vld [vmem:[%s3164_s4 + $0x98] sm:$0xff] }
  0x2b   :  { %175 = vperm.xlu1 %2053, %v77_v30   ;;  %170 = vperm.xlu0 %2052, %v76_v31  }
  0x2e   :  { %1830 = vmatmul.msk.f32.gmra.mxu0 %vm253_vm0, %v32_v32  ;;  %1847 = vmatmul.msk.f32.gmra.mxu2 %vm253_vm0, %v49_v33 }
  0x2f   :  { %1862 = vmatmul.msk.f32.gmra.mxu1 %vm253_vm0, %v32_v32  ;;  %1878 = vmatmul.msk.f32.gmra.mxu3 %vm253_vm0, %v48_v28  ;;  %v724_v28 = vld [vmem:[%s3164_s4 + $0xa0] sm:$0xff] }
  0x32   :  { %240 = vperm.xlu2 %2054, %v90_v34  }
  0x33   :  { %235 = vperm.xlu1 %2053, %v89_v35   ;;  %250 = vperm.xlu0 %2052, %v92_v36  }
  0x36   :  { %1831 = vmatmul.msk.f32.gmra.mxu0 %vm253_vm0, %v33_v37  ;;  %1848 = vmatmul.msk.f32.gmra.mxu2 %vm253_vm0, %v50_v38 }
  0x37   :  { %1863 = vmatmul.msk.f32.gmra.mxu1 %vm253_vm0, %v33_v37  ;;  %1879 = vmatmul.msk.f32.gmra.mxu3 %vm253_vm0, %v49_v33 }
  0x3a   :  { %215 = vperm.xlu2 %2054, %v85_v39  }
  0x3b   :  { %230 = vperm.xlu1 %2053, %v88_v40   ;;  %225 = vperm.xlu0 %2052, %v87_v41   ;;  %v728_v41 = vld [vmem:[%s3164_s4 + $0xc0] sm:$0xff] }
  0x3e   :  { %1832 = vmatmul.msk.f32.gmra.mxu0 %vm253_vm0, %v34_v42  ;;  %1849 = vmatmul.msk.f32.gmra.mxu2 %vm253_vm0, %v51_v43 }
  0x3f   :  { %1864 = vmatmul.msk.f32.gmra.mxu1 %vm253_vm0, %v34_v42  ;;  %1880 = vmatmul.msk.f32.gmra.mxu3 %vm253_vm0, %v50_v38  ;;  %v727_v42 = vld [vmem:[%s3164_s4 + $0xb8] sm:$0xff] }
  0x42   :  { %210 = vperm.xlu2 %2054, %v84_v44  }
  0x43   :  { %205 = vperm.xlu1 %2053, %v83_v45   ;;  %220 = vperm.xlu0 %2052, %v86_v46  }
  0x46   :  { %1833 = vmatmul.msk.f32.gmra.mxu0 %vm253_vm0, %v35_v47  ;;  %1850 = vmatmul.msk.f32.gmra.mxu2 %vm253_vm0, %v52_v48 }
  0x47   :  { %1865 = vmatmul.msk.f32.gmra.mxu1 %vm253_vm0, %v35_v47  ;;  %1881 = vmatmul.msk.f32.gmra.mxu3 %vm253_vm0, %v51_v43  ;;  %v726_v43 = vld [vmem:[%s3164_s4 + $0xb0] sm:$0xff] }
  0x4a   :  { %185 = vperm.xlu2 %2054, %v79_v49  }
  0x4b   :  { %200 = vperm.xlu1 %2053, %v82_v50   ;;  %195 = vperm.xlu0 %2052, %v81_v51  }
  0x4e   :  { %1834 = vmatmul.msk.f32.gmra.mxu0 %vm253_vm0, %v36_v52  ;;  %1851 = vmatmul.msk.f32.gmra.mxu2 %vm253_vm0, %v53_v53 }
  0x4f   :  { %1866 = vmatmul.msk.f32.gmra.mxu1 %vm253_vm0, %v36_v52  ;;  %1882 = vmatmul.msk.f32.gmra.mxu3 %vm253_vm0, %v52_v48  ;;  %v731_v52 = vld [vmem:[%s3164_s4 + $0xd8] sm:$0xff] }
  0x52   :  { %738 = vperm.xlu2 %2054, %v704_v54   ;;  %v729_v54 = vld [vmem:[%s3164_s4 + $0xc8] sm:$0xff] }
  0x53   :  { %180 = vperm.xlu1 %2053, %v78_v55   ;;  %190 = vperm.xlu0 %2052, %v80_v56  }
  0x56   :  { %1835 = vmatmul.msk.f32.gmra.mxu0 %vm253_vm0, %v37_v57  ;;  %1852 = vmatmul.msk.f32.gmra.mxu2 %vm253_vm0, %v54_v58 }
  0x57   :  { %1867 = vmatmul.msk.f32.gmra.mxu1 %vm253_vm0, %v37_v57  ;;  %1883 = vmatmul.msk.f32.gmra.mxu3 %vm253_vm0, %v53_v53  ;;  %v730_v53 = vld [vmem:[%s3164_s4 + $0xd0] sm:$0xff] }
  0x5a   :  { %753 = vperm.xlu2 %2054, %v707_v59  }
  0x5b   :  { %748 = vperm.xlu1 %2053, %v706_v60   ;;  %743 = vperm.xlu0 %2052, %v705_v61  }
  0x5e   :  { %1836 = vmatmul.msk.f32.gmra.mxu0 %vm253_vm0, %v38_v62  ;;  %1853 = vmatmul.msk.f32.gmra.mxu2 %vm253_vm0, %v55_v63 }
  0x5f   :  { %1868 = vmatmul.msk.f32.gmra.mxu1 %vm253_vm0, %v38_v62  ;;  %1884 = vmatmul.msk.f32.gmra.mxu3 %vm253_vm0, %v54_v58 }
  0x62   :  { %768 = vperm.xlu2 %2054, %v710_v0  }
  0x63   :  { %763 = vperm.xlu1 %2053, %v709_v1   ;;  %758 = vperm.xlu0 %2052, %v708_v2  }
  0x66   :  { %1837 = vmatmul.msk.f32.gmra.mxu0 %vm253_vm0, %v39_v3  ;;  %1854 = vmatmul.msk.f32.gmra.mxu2 %vm253_vm0, %v56_v4 }
  0x67   :  { %1869 = vmatmul.msk.f32.gmra.mxu1 %vm253_vm0, %v39_v3  ;;  %1885 = vmatmul.msk.f32.gmra.mxu3 %vm253_vm0, %v55_v63  ;;  %v734_v3 = vld [vmem:[%s3164_s4 + $0xf0] sm:$0xff] }
  0x6a   :  { %783 = vperm.xlu2 %2054, %v713_v5   ;;  %v732_v5 = vld [vmem:[%s3164_s4 + $0xe0] sm:$0xff] }
  0x6b   :  { %778 = vperm.xlu1 %2053, %v712_v6   ;;  %773 = vperm.xlu0 %2052, %v711_v7   ;;  %v116_v7 = vpop.permute.xlu2 %115 }
  0x6e   :  { %1838 = vmatmul.msk.f32.gmra.mxu0 %vm253_vm0, %v40_v9  ;;  %1855 = vmatmul.msk.f32.gmra.mxu2 %vm253_vm0, %v57_v10 }
  0x6f   :  { %1870 = vmatmul.msk.f32.gmra.mxu1 %vm253_vm0, %v40_v9  ;;  %1886 = vmatmul.msk.f32.gmra.mxu3 %vm253_vm0, %v56_v4  ;;  %v733_v4 = vld [vmem:[%s3164_s4 + $0xe8] sm:$0xff] }
  0x72   :  { %798 = vperm.xlu2 %2054, %v716_v11  }
  0x73   :  { %793 = vperm.xlu1 %2053, %v715_v12   ;;  %788 = vperm.xlu0 %2052, %v714_v13  }
  0x75   :  { %v96_v23 = vpop.permute.xlu0 %95  ;;  %v106_v45 = vpop.permute.xlu1 %105 }
  0x76   :  { %1839 = vmatmul.msk.f32.gmra.mxu0 %vm253_vm0, %v41_v14  ;;  %1856 = vmatmul.msk.f32.gmra.mxu2 %vm253_vm0, %v58_v15 }
  0x77   :  { %1871 = vmatmul.msk.f32.gmra.mxu1 %vm253_vm0, %v41_v14  ;;  %1887 = vmatmul.msk.f32.gmra.mxu3 %vm253_vm0, %v57_v10 }
  0x7a   :  { %813 = vperm.xlu2 %2054, %v719_v16   ;;  %v1476_v16 = vld [vmem:[%s3165_s5] sm:$0xff] }
  0x7b   :  { %808 = vperm.xlu1 %2053, %v718_v17   ;;  %803 = vperm.xlu0 %2052, %v717_v18   ;;  %v735_v17 = vld [vmem:[%s3164_s4 + $0xf8] sm:$0xff] }
  0x7d   :  { %v101_v33 = vpop.permute.xlu0 %100  ;;  %v111_v58 = vpop.permute.xlu1 %110 }
  0x7e   :  { %1840 = vmatmul.msk.f32.gmra.mxu0 %vm253_vm0, %v42_v19 }
  0x7f   :  { %1872 = vmatmul.msk.f32.gmra.mxu1 %vm253_vm0, %v42_v19  ;;  %1888 = vmatmul.msk.f32.gmra.mxu3 %vm253_vm0, %v58_v15  ;;  %v1477_v15 = vld [vmem:[%s3165_s5 + $0x8] sm:$0xff] }
  0x82   :  { %828 = vperm.xlu2 %2054, %v722_v20  }
  0x83   :  { %v367_v24 = vpop.f32.mrf.mxu0  ;;  %823 = vperm.xlu1 %2053, %v721_v21   ;;  %818 = vperm.xlu0 %2052, %v720_v22   ;;  %v2494_v21 = vpop.permute.xlu2 %120 }
  0x84   :  { %v480_v25 = vpop.f32.mrf.mxu1  ;;  %v368_v31 = vadd.f32 %v367_v24, %v96_v23 }
  0x85   :  { %v481_v26 = vadd.f32 %v480_v25, %v96_v23 }
  0x86   :  { %1841 = vmatmul.msk.f32.gmra.mxu0 %vm253_vm0, %v2120_v8  ;;  %v576_v37 = vmax.f32 %v368_v31, 0.0 }
  0x87   :  { %v577_v39 = vmax.f32 %v481_v26, 0.0 }
  0x89   :  { %v2428_v30 = vpop.f32.mrf.mxu2 }
  0x8a   :  { %3174 = vst [vmem:[#allocation3_spill] sm:$0xff] %v2428_v30  ;;  %v2430_v32 = vpop.f32.mrf.mxu3  ;;  %843 = vperm.xlu2 %2054, %v725_v27   ;;  %v1480_v27 = vld [vmem:[%s3165_s5 + $0x20] sm:$0xff] }
  0x8b   :  { %3175 = vst [vmem:[#allocation4_spill] sm:$0xff] %v2430_v32  ;;  %v370_v8 = vpop.f32.mrf.mxu0  ;;  %838 = vperm.xlu1 %2053, %v724_v28   ;;  %833 = vperm.xlu0 %2052, %v723_v29   ;;  %v1479_v28 = vld [vmem:[%s3165_s5 + $0x18] sm:$0xff]  ;;  %v1478_v29 = vld [vmem:[%s3165_s5 + $0x10] sm:$0xff] }
  0x8c   :  { %v371_v34 = vadd.f32 %v370_v8, %v101_v33  ;;  %v483_v35 = vpop.f32.mrf.mxu1 }
  0x8d   :  { %v484_v36 = vadd.f32 %v483_v35, %v101_v33 }
  0x8e   :  { %v578_v38 = vmax.f32 %v371_v34, 0.0 }
  0x8f   :  { %v579_v40 = vmax.f32 %v484_v36, 0.0  ;;  %v1483_v36 = vld [vmem:[%s3165_s5 + $0x38] sm:$0xff] }
  0x90   :  { %v2441_v44 = vpack.c.bf16 %v578_v38, %v576_v37  ;;  %v1482_v37 = vld [vmem:[%s3165_s5 + $0x30] sm:$0xff]  ;;  %v1481_v38 = vld [vmem:[%s3165_s5 + $0x28] sm:$0xff] }
  0x91   :  { %v2443_v46 = vpop.f32.mrf.mxu2  ;;  %v2445_v47 = vpack.c.bf16 %v579_v40, %v577_v39  ;;  %v2527_v39 = vpop.permute.xlu1 %130 }
  0x92   :  { %3176 = vst [vmem:[#allocation5_spill] sm:$0xff] %v2441_v44  ;;  %v2447_v48 = vpop.f32.mrf.mxu3  ;;  %858 = vperm.xlu2 %2054, %v728_v41   ;;  %v2531_v41 = vpop.permute.xlu2 %135  ;;  %v1500_v44 = vld [vmem:[%s3165_s5 + $0xc0] sm:$0xff] }
  0x93   :  { %3177 = vst [vmem:[#allocation6_spill] sm:$0xff] %v2443_v46  ;;  %v373_v49 = vpop.f32.mrf.mxu0  ;;  %853 = vperm.xlu1 %2053, %v727_v42   ;;  %848 = vperm.xlu0 %2052, %v726_v43   ;;  %v2535_v43 = vpop.permute.xlu0 %125 }
  0x94   :  { %3178 = vst [vmem:[#allocation7_spill] sm:$0xff] %v2445_v47  ;;  %v486_v50 = vpop.f32.mrf.mxu1  ;;  %v374_v56 = vadd.f32 %v373_v49, %v106_v45  ;;  %v1501_v47 = vld [vmem:[%s3165_s5 + $0xc8] sm:$0xff] }
  0x95   :  { %3179 = vst [vmem:[#allocation8_spill] sm:$0xff] %v2447_v48  ;;  %v487_v51 = vadd.f32 %v486_v50, %v106_v45  ;;  %v1486_v50 = vld [vmem:[%s3165_s5 + $0x50] sm:$0xff] }
  0x96   :  { %v580_v63 = vmax.f32 %v374_v56, 0.0 }
  0x97   :  { %v581_v1 = vmax.f32 %v487_v51, 0.0  ;;  %v1485_v51 = vld [vmem:[%s3165_s5 + $0x48] sm:$0xff] }
  0x99   :  { %v2458_v55 = vpop.f32.mrf.mxu2  ;;  %v2554_v56 = vpop.permute.xlu1 %145 }
  0x9a   :  { %3180 = vst [vmem:[#allocation9_spill] sm:$0xff] %v2458_v55  ;;  %v2460_v57 = vpop.f32.mrf.mxu3  ;;  %873 = vperm.xlu2 %2054, %v731_v52   ;;  %v1484_v52 = vld [vmem:[%s3165_s5 + $0x40] sm:$0xff] }
  0x9b   :  { %3181 = vst [vmem:[#allocation10_spill] sm:$0xff] %v2460_v57  ;;  %v376_v59 = vpop.f32.mrf.mxu0  ;;  %868 = vperm.xlu1 %2053, %v730_v53   ;;  %863 = vperm.xlu0 %2052, %v729_v54  }
  0x9c   :  { %v377_v60 = vadd.f32 %v376_v59, %v111_v58  ;;  %v489_v61 = vpop.f32.mrf.mxu1  ;;  %v2558_v59 = vpop.permute.xlu2 %150 }
  0x9d   :  { %v490_v62 = vadd.f32 %v489_v61, %v111_v58  ;;  %v2562_v61 = vpop.permute.xlu0 %140 }
  0x9e   :  { %v582_v0 = vmax.f32 %v377_v60, 0.0 }
  0x9f   :  { %v583_v2 = vmax.f32 %v490_v62, 0.0  ;;  %v1489_v62 = vld [vmem:[%s3165_s5 + $0x68] sm:$0xff] }
  0xa0   :  { %v2471_v6 = vpack.c.bf16 %v582_v0, %v580_v63  ;;  %v1488_v63 = vld [vmem:[%s3165_s5 + $0x60] sm:$0xff]  ;;  %v1487_v0 = vld [vmem:[%s3165_s5 + $0x58] sm:$0xff] }
  0xa1   :  { %v2473_v9 = vpop.f32.mrf.mxu2  ;;  %v2475_v10 = vpack.c.bf16 %v583_v2, %v581_v1 }
  0xa2   :  { %3182 = vst [vmem:[#allocation11_spill] sm:$0xff] %v2471_v6  ;;  %v2477_v11 = vpop.f32.mrf.mxu3  ;;  %888 = vperm.xlu2 %2054, %v734_v3  }
  0xa3   :  { %3183 = vst [vmem:[#allocation12_spill] sm:$0xff] %v2475_v10  ;;  %v379_v12 = vpop.f32.mrf.mxu0  ;;  %883 = vperm.xlu1 %2053, %v733_v4   ;;  %878 = vperm.xlu0 %2052, %v732_v5   ;;  %v2581_v5 = vpop.permute.xlu1 %160 }
  0xa4   :  { %3184 = vst [vmem:[#allocation13_spill] sm:$0xff] %v2477_v11  ;;  %v492_v13 = vpop.f32.mrf.mxu1  ;;  %v380_v19 = vadd.f32 %v379_v12, %v116_v7  ;;  %v1504_v11 = vld [vmem:[%s3165_s5 + $0xe0] sm:$0xff] }
  0xa5   :  { %v2479_v14 = vadd.f32 %v492_v13, %v116_v7  ;;  %v2583_v7 = vpop.permute.xlu2 %165  ;;  %v2585_v12 = vpop.permute.xlu0 %155  ;;  %v1492_v13 = vld [vmem:[%s3165_s5 + $0x80] sm:$0xff] }
  0xa6   :  { %v584_v25 = vmax.f32 %v380_v19, 0.0 }
  0xa7   :  { %3185 = vst [vmem:[#allocation14_spill] sm:$0xff] %v2479_v14 }
  0xa9   :  { %v2490_v18 = vpop.f32.mrf.mxu2 }
  0xaa   :  { %v2492_v20 = vpop.f32.mrf.mxu3  ;;  %1515 = vperm.xlu2 %2054, %v1477_v15   ;;  %v1491_v15 = vld [vmem:[%s3165_s5 + $0x78] sm:$0xff] }
  0xab   :  { %3186 = vst [vmem:[#allocation15_spill] sm:$0xff] %v2492_v20  ;;  %v382_v22 = vpop.f32.mrf.mxu0  ;;  %1510 = vperm.xlu1 %2053, %v1476_v16   ;;  %893 = vperm.xlu0 %2052, %v735_v17   ;;  %v1490_v16 = vld [vmem:[%s3165_s5 + $0x70] sm:$0xff] }
  0xac   :  { %v383_v23 = vadd.f32 %v382_v22, %v2494_v21  ;;  %v2497_v24 = vpop.f32.mrf.mxu1 }
  0xad   :  { %v2682_v14 = vadd.f32 %v2497_v24, %v2494_v21 }
  0xae   :  { %v586_v26 = vmax.f32 %v383_v23, 0.0 }
  0xaf   :  { %3196 = vst [vmem:[#allocation25_spill] sm:$0xff] %v2682_v14  ;;  %v1505_v14 = vld [vmem:[%s3165_s5 + $0xe8] sm:$0xff] }
  0xb0   :  { %v2508_v31 = vpack.c.bf16 %v586_v26, %v584_v25  ;;  %v2604_v25 = vpop.permute.xlu1 %175  ;;  %v1495_v26 = vld [vmem:[%s3165_s5 + $0x98] sm:$0xff] }
  0xb1   :  { %v2510_v33 = vpop.f32.mrf.mxu2  ;;  %3192 = vst [vmem:[#allocation21_spill] sm:$0xff] %v2604_v25 }
  0xb2   :  { %3187 = vst [vmem:[#allocation16_spill] sm:$0xff] %v2508_v31  ;;  %v2512_v8 = vpop.f32.mrf.mxu3  ;;  %1530 = vperm.xlu2 %2054, %v1480_v27   ;;  %v2609_v27 = vpop.permute.xlu2 %245  ;;  %v1503_v31 = vld [vmem:[%s3165_s5 + $0xd8] sm:$0xff] }
  0xb3   :  { %3188 = vst [vmem:[#allocation17_spill] sm:$0xff] %v2512_v8  ;;  %v2514_v34 = vpop.f32.mrf.mxu0  ;;  %1525 = vperm.xlu1 %2053, %v1479_v28   ;;  %1520 = vperm.xlu0 %2052, %v1478_v29   ;;  %v1494_v28 = vld [vmem:[%s3165_s5 + $0x90] sm:$0xff]  ;;  %v1493_v29 = vld [vmem:[%s3165_s5 + $0x88] sm:$0xff] }
  0xb4   :  { %v2516_v35 = vpop.f32.mrf.mxu1 }
  0xb9   :  { %v2529_v40 = vpop.f32.mrf.mxu2 }
  0xba   :  { %v2533_v42 = vpop.f32.mrf.mxu3  ;;  %1545 = vperm.xlu2 %2054, %v1483_v36   ;;  %v2617_v36 = vpop.permute.xlu0 %170 }
  0xbb   :  { %3189 = vst [vmem:[#allocation18_spill] sm:$0xff] %v2533_v42  ;;  %v2537_v45 = vpop.f32.mrf.mxu0  ;;  %1540 = vperm.xlu1 %2053, %v1482_v37   ;;  %1535 = vperm.xlu0 %2052, %v1481_v38  }
  0xbc   :  { %v2539_v49 = vpop.f32.mrf.mxu1 }
  0xc1   :  { %v2550_v53 = vpop.f32.mrf.mxu2 }
  0xc2   :  { %v2552_v54 = vpop.f32.mrf.mxu3  ;;  %1560 = vperm.xlu2 %2054, %v1486_v50  }
  0xc3   :  { %3190 = vst [vmem:[#allocation19_spill] sm:$0xff] %v2552_v54  ;;  %v2556_v58 = vpop.f32.mrf.mxu0  ;;  %1555 = vperm.xlu1 %2053, %v1485_v51   ;;  %1550 = vperm.xlu0 %2052, %v1484_v52   ;;  %v1498_v52 = vld [vmem:[%s3165_s5 + $0xb0] sm:$0xff] }
  0xc4   :  { %v2560_v60 = vpop.f32.mrf.mxu1 }
  0xc9   :  { %v2573_v1 = vpop.f32.mrf.mxu2 }
  0xca   :  { %v2575_v2 = vpop.f32.mrf.mxu3  ;;  %1575 = vperm.xlu2 %2054, %v1489_v62   ;;  %v1497_v62 = vld [vmem:[%s3165_s5 + $0xa8] sm:$0xff] }
  0xcb   :  { %3191 = vst [vmem:[#allocation20_spill] sm:$0xff] %v2575_v2  ;;  %v2577_v3 = vpop.f32.mrf.mxu0  ;;  %1570 = vperm.xlu1 %2053, %v1488_v63   ;;  %1565 = vperm.xlu0 %2052, %v1487_v0   ;;  %v1496_v63 = vld [vmem:[%s3165_s5 + $0xa0] sm:$0xff]  ;;  %v2636_v0 = vpop.permute.xlu1 %235 }
  0xcc   :  { %v2579_v4 = vpop.f32.mrf.mxu1 }
  0xd1   :  { %v2596_v17 = vpop.f32.mrf.mxu2 }
  0xd2   :  { %v2598_v19 = vpop.f32.mrf.mxu3  ;;  %1590 = vperm.xlu2 %2054, %v1492_v13  }
  0xd3   :  { %v2600_v22 = vpop.f32.mrf.mxu0  ;;  %1585 = vperm.xlu1 %2053, %v1491_v15   ;;  %1580 = vperm.xlu0 %2052, %v1490_v16   ;;  %v2638_v15 = vpop.permute.xlu2 %240 }
  0xd4   :  { %v2602_v23 = vpop.f32.mrf.mxu1 }
  0xd9   :  { %v2619_v37 = vpop.f32.mrf.mxu2 }
  0xda   :  { %v2621_v38 = vpop.f32.mrf.mxu3  ;;  %1605 = vperm.xlu2 %2054, %v1495_v26   ;;  %v2642_v26 = vpop.permute.xlu0 %250 }
  0xdb   :  { %v2623_v50 = vpop.f32.mrf.mxu0  ;;  %1600 = vperm.xlu1 %2053, %v1494_v28   ;;  %1595 = vperm.xlu0 %2052, %v1493_v29   ;;  %v2661_v48 = vpop.permute.xlu2 %215 }
  0xdc   :  { %v2625_v51 = vpop.f32.mrf.mxu1  ;;  %3193 = vst [vmem:[#allocation22_spill] sm:$0xff] %v2661_v48 }
  0xe1   :  { %v451_v13 = vpop.f32.mrf.mxu2 }
  0xe2   :  { %v2640_v16 = vpop.f32.mrf.mxu3  ;;  %1620 = vperm.xlu2 %2054, %v1498_v52   ;;  %v1499_v52 = vld [vmem:[%s3165_s5 + $0xb8] sm:$0xff]  ;;  %v2663_v57 = vpop.permute.xlu0 %225 }
  0xe3   :  { %v2644_v28 = vpop.f32.mrf.mxu0  ;;  %1615 = vperm.xlu1 %2053, %v1497_v62   ;;  %1610 = vperm.xlu0 %2052, %v1496_v63   ;;  %v2659_v62 = vpop.permute.xlu1 %230 }
  0xe4   :  { %v2646_v29 = vpop.f32.mrf.mxu1  ;;  %v2678_v25 = vpop.permute.xlu2 %210 }
  0xe5   :  { %3195 = vst [vmem:[#allocation24_spill] sm:$0xff] %v2678_v25  ;;  %v2688_v46 = vadd.f32 %v2529_v40, %v2678_v25  ;;  %v1506_v40 = vld [vmem:[%s3165_s5 + $0xf0] sm:$0xff] }
  0xe7   :  { %3197 = vst [vmem:[#allocation26_spill] sm:$0xff] %v2688_v46 }
  0xe9   :  { %v454_v32 = vpop.f32.mrf.mxu2 }
  0xea   :  { %v2657_v10 = vpop.f32.mrf.mxu3  ;;  %1635 = vperm.xlu2 %2054, %v1501_v47   ;;  %v1502_v47 = vld [vmem:[%s3165_s5 + $0xd0] sm:$0xff]  ;;  %v2684_v42 = vpop.permute.xlu0 %220 }
  0xeb   :  { %v406_v63 = vpop.f32.mrf.mxu0  ;;  %1630 = vperm.xlu1 %2053, %v1500_v44   ;;  %1625 = vperm.xlu0 %2052, %v1499_v52   ;;  %v2676_v8 = vpop.permute.xlu1 %205 }
  0xec   :  { %v519_v6 = vpop.f32.mrf.mxu1  ;;  %3194 = vst [vmem:[#allocation23_spill] sm:$0xff] %v2676_v8  ;;  %v2703_v21 = vadd.f32 %v2510_v33, %v2676_v8  ;;  %v2722_v33 = vadd.f32 %v2556_v58, %v2531_v41  ;;  %v2730_v8 = vadd.f32 %v2577_v3, %v2562_v61 }
  0xf1   :  { %v457_v30 = vpop.f32.mrf.mxu2 }
  0xf2   :  { %v2674_v44 = vpop.f32.mrf.mxu3  ;;  %1650 = vperm.xlu2 %2054, %v1504_v11   ;;  %v1507_v11 = vld [vmem:[%s3165_s5 + $0xf8] sm:$0xff]  ;;  %v458_v24 = vadd.f32 %v457_v30, %v2609_v27  ;;  %v2726_v30 = vadd.f32 %v2573_v1, %v2684_v42  ;;  %v452_v1 = vadd.f32 %v451_v13, %v2636_v0  ;;  %v520_v13 = vadd.f32 %v519_v6, %v2581_v5 }
  0xf3   :  { %v409_v52 = vpop.f32.mrf.mxu0  ;;  %1645 = vperm.xlu1 %2053, %v1503_v31   ;;  %1640 = vperm.xlu0 %2052, %v1502_v47   ;;  %v2695_v31 = vadd.f32 %v2514_v34, %v2535_v43  ;;  %v2699_v47 = vadd.f32 %v2516_v35, %v2535_v43  ;;  %v2714_v34 = vadd.f32 %v2537_v45, %v2527_v39 }
  0xf4   :  { %v522_v20 = vpop.f32.mrf.mxu1  ;;  %v2718_v35 = vadd.f32 %v2550_v53, %v2661_v48  ;;  %v455_v45 = vadd.f32 %v454_v32, %v2638_v15  ;;  %v410_v54 = vadd.f32 %v409_v52, %v2583_v7  ;;  %v407_v32 = vadd.f32 %v406_v63, %v2581_v5 }
  0xf5   :  { %3198 = vst [vmem:[#allocation27_spill] sm:$0xff] %v2699_v47  ;;  %v446_v47 = vadd.f32 %v2596_v17, %v2663_v57  ;;  %v523_v55 = vadd.f32 %v522_v20, %v2583_v7  ;;  %v636_v3 = vmax.f32 %v458_v24, 0.0  ;;  %v404_v17 = vadd.f32 %v2644_v28, %v2585_v12 }
  0xf6   :  { %v634_v7 = vmax.f32 %v455_v45, 0.0  ;;  %v401_v63 = vadd.f32 %v2623_v50, %v2558_v59  ;;  %v632_v28 = vmax.f32 %v452_v1, 0.0  ;;  %v602_v46 = vmax.f32 %v407_v32, 0.0 }
  0xf7   :  { %v605_v24 = vmax.f32 %v523_v55, 0.0  ;;  %v603_v5 = vmax.f32 %v520_v13, 0.0  ;;  %v398_v55 = vadd.f32 %v2600_v22, %v2554_v56  ;;  %v511_v45 = vadd.f32 %v2602_v23, %v2554_v56 }
  0xf8   :  { %v565_v32 = vadd.f32 %v2657_v10, %v2636_v0  ;;  %v505_v56 = vadd.f32 %v2560_v60, %v2531_v41  ;;  %v626_v23 = vmax.f32 %v2726_v30, 0.0  ;;  %v502_v0 = vadd.f32 %v2539_v49, %v2527_v39 }
  0xf9   :  { %v460_v43 = vpop.f32.mrf.mxu2  ;;  %v594_v41 = vmax.f32 %v2730_v8, 0.0  ;;  %v559_v13 = vadd.f32 %v2621_v38, %v2663_v57  ;;  %v592_v49 = vmax.f32 %v2722_v33, 0.0  ;;  %v588_v38 = vmax.f32 %v2695_v31, 0.0  ;;  %v3202_v31 = vld [vmem:[#allocation26_spill] sm:$0xff] }
  0xfa   :  { %v461_v53 = vadd.f32 %v460_v43, %v2642_v26  ;;  %v570_v25 = vpop.f32.mrf.mxu3  ;;  %1665 = vperm.xlu2 %2054, %v1507_v11   ;;  %v449_v11 = vadd.f32 %v2619_v37, %v2659_v62  ;;  %v514_v37 = vadd.f32 %v2625_v51, %v2558_v59  ;;  %v700_v51 = vpack.c.bf16 %v634_v7, %v632_v28 }
  0xfb   :  { %v412_v2 = vpop.f32.mrf.mxu0  ;;  %1660 = vperm.xlu1 %2053, %v1506_v40   ;;  %1655 = vperm.xlu0 %2052, %v1505_v14   ;;  %v604_v40 = vmax.f32 %v410_v54, 0.0  ;;  %v2758_v54 = vadd.f32 %v2579_v4, %v2562_v61  ;;  %v568_v61 = vadd.f32 %v2674_v44, %v2638_v15  ;;  %v596_v15 = vmax.f32 %v398_v55, 0.0  ;;  %v2773_v44 = vpop.permute.xlu1 %200  ;;  %v3205_v55 = vld [vmem:[#allocation24_spill] sm:$0xff] }
  0xfc   :  { %v638_v52 = vmax.f32 %v461_v53, 0.0  ;;  %v413_v43 = vadd.f32 %v412_v2, %v2617_v36  ;;  %v525_v48 = vpop.f32.mrf.mxu1  ;;  %v517_v2 = vadd.f32 %v2646_v29, %v2585_v12  ;;  %v630_v12 = vmax.f32 %v449_v11, 0.0 }
  0xfd   :  { %v526_v20 = vadd.f32 %v525_v48, %v2617_v36  ;;  %v2754_v48 = vpop.permute.xlu0 %195  ;;  %v571_v36 = vadd.f32 %v570_v25, %v2609_v27  ;;  %v600_v29 = vmax.f32 %v404_v17, 0.0  ;;  %v628_v25 = vmax.f32 %v446_v47, 0.0 }
  0xfe   :  { %v606_v14 = vmax.f32 %v413_v43, 0.0  ;;  %v702_v58 = vpack.c.bf16 %v638_v52, %v636_v3  ;;  %v598_v27 = vmax.f32 %v401_v63, 0.0  ;;  %v599_v1 = vmax.f32 %v514_v37, 0.0 }
  0xff   :  { %v607_v53 = vmax.f32 %v526_v20, 0.0  ;;  %v684_v22 = vpack.c.bf16 %v602_v46, %v600_v29  ;;  %v637_v3 = vmax.f32 %v571_v36, 0.0  ;;  %v597_v47 = vmax.f32 %v511_v45, 0.0 }
 0x100   :  { %1145 = vmatpush.bf16.msrb.mxu3 %v702_v58  ;;  %v686_v6 = vpack.c.bf16 %v606_v14, %v604_v40  ;;  %v601_v58 = vmax.f32 %v517_v2, 0.0  ;;  %v562_v46 = vadd.f32 %v2640_v16, %v2659_v62  ;;  %v635_v11 = vmax.f32 %v568_v61, 0.0  ;;  %v186_v2 = vpop.permute.xlu2 %185 }
 0x101   :  { %v687_v50 = vpack.c.bf16 %v607_v53, %v605_v24  ;;  %v624_v17 = vmax.f32 %v2718_v35, 0.0  ;;  %v682_v60 = vpack.c.bf16 %v598_v27, %v596_v15  ;;  %v595_v30 = vmax.f32 %v2758_v54, 0.0  ;;  %v3199_v24 = vld [vmem:[#allocation22_spill] sm:$0xff]  ;;  %v3200_v53 = vld [vmem:[#allocation20_spill] sm:$0xff]  ;;  %v3201_v54 = vld [vmem:[#allocation9_spill] sm:$0xff] }
 0x102   :  { %v573_v59 = vpop.f32.mrf.mxu3  ;;  %1056 = vmatpush.bf16.msrb.mxu2 %v686_v6  ;;  %v685_v43 = vpack.c.bf16 %v603_v5, %v601_v58  ;;  %v633_v20 = vmax.f32 %v565_v32, 0.0  ;;  %v683_v16 = vpack.c.bf16 %v599_v1, %v597_v47  ;;  %v431_v62 = vadd.f32 %v2490_v18, %v2773_v44  ;;  %v3207_v58 = vld [vmem:[#allocation6_spill] sm:$0xff]  ;;  %v3209_v1 = vld [vmem:[#allocation23_spill] sm:$0xff] }
 0x103   :  { %v574_v4 = vadd.f32 %v573_v59, %v2642_v26  ;;  %1234 = vmatpush.bf16.msrb.mxu0 %v687_v50  ;;  %v698_v26 = vpack.c.bf16 %v630_v12, %v628_v25  ;;  %v428_v39 = vadd.f32 %v2473_v9, %v2754_v48  ;;  %v696_v8 = vpack.c.bf16 %v626_v23, %v624_v17  ;;  %v3204_v50 = vld [vmem:[#allocation27_spill] sm:$0xff]  ;;  %v3208_v25 = vld [vmem:[#allocation25_spill] sm:$0xff] }
 0x104   :  { %1146 = vmatpush.bf16.msrb.mxu3 %v700_v51  ;;  %v593_v35 = vmax.f32 %v505_v56, 0.0  ;;  %v556_v40 = vadd.f32 %v2598_v19, %v2684_v42  ;;  %v631_v14 = vmax.f32 %v562_v46, 0.0  ;;  %v701_v57 = vpack.c.bf16 %v635_v11, %v633_v20  ;;  %v3206_v12 = vld [vmem:[#allocation19_spill] sm:$0xff]  ;;  %v415_v51 = vpop.f32.mrf.mxu0  ;;  %v3211_v56 = vld [vmem:[#allocation14_spill] sm:$0xff]  ;;  %v3213_v11 = vld [vmem:[#allocation17_spill] sm:$0xff] }
 0x105   :  { %v639_v52 = vmax.f32 %v574_v4, 0.0  ;;  %v191_v7 = vpop.permute.xlu0 %190  ;;  %v620_v63 = vmax.f32 %v2703_v21, 0.0  ;;  %v590_v18 = vmax.f32 %v2714_v34, 0.0  ;;  %v680_v9 = vpack.c.bf16 %v594_v41, %v592_v49  ;;  %v3216_v49 = vld [vmem:[#allocation16_spill] sm:$0xff] }
 0x106   :  { %1057 = vmatpush.bf16.msrb.mxu2 %v684_v22  ;;  %v591_v33 = vmax.f32 %v502_v0, 0.0  ;;  %v553_v37 = vadd.f32 %v3200_v53, %v3199_v24  ;;  %v629_v28 = vmax.f32 %v559_v13, 0.0  ;;  %v681_v6 = vpack.c.bf16 %v595_v30, %v593_v35  ;;  %v3210_v22 = vld [vmem:[#allocation18_spill] sm:$0xff]  ;;  %v3214_v0 = vld [vmem:[#allocation15_spill] sm:$0xff]  ;;  %v2018_v53 = vld [vmem:[%s3166_s3 + $0x4] sm:$0xf0] }
 0x107   :  { %1235 = vmatpush.bf16.msrb.mxu0 %v685_v43  ;;  %v703_v10 = vpack.c.bf16 %v639_v52, %v637_v3  ;;  %v618_v42 = vmax.f32 %v431_v62, 0.0  ;;  %v616_v19 = vmax.f32 %v428_v39, 0.0  ;;  %v425_v5 = vadd.f32 %v3201_v54, %v191_v7  ;;  %v181_v3 = vpop.permute.xlu1 %180  ;;  %v3215_v13 = vld [vmem:[#allocation3_spill] sm:$0xff] }
 0x108   :  { %1147 = vmatpush.bf16.msrb.mxu3 %v698_v26  ;;  %v3203_v36 = vmax.f32 %v3202_v31, 0.0  ;;  %v589_v34 = vmax.f32 %v3204_v50, 0.0  ;;  %v550_v29 = vadd.f32 %v3206_v12, %v3205_v55  ;;  %v627_v59 = vmax.f32 %v556_v40, 0.0  ;;  %v3212_v26 = vld [vmem:[#allocation21_spill] sm:$0xff] }
 0x109   :  { %1323 = vmatpush.bf16.msrb.mxu1 %v703_v10  ;;  %v699_v45 = vpack.c.bf16 %v631_v14, %v629_v28  ;;  %v422_v61 = vadd.f32 %v3207_v58, %v186_v2  ;;  %v678_v4 = vpack.c.bf16 %v590_v18, %v588_v38  ;;  %v587_v27 = vmax.f32 %v3208_v25, 0.0  ;;  %v2017_v38 = vld [vmem:[%s3166_s3 + $0x4] sm:$0xf]  ;;  %v3218_v18 = vld [vmem:[#allocation10_spill] sm:$0xff] }
 0x10a   :  { %1058 = vmatpush.bf16.msrb.mxu2 %v682_v60  ;;  %v694_v21 = vpack.c.bf16 %v3203_v36, %v620_v63  ;;  %v547_v32 = vadd.f32 %v3210_v22, %v3209_v1  ;;  %v625_v52 = vmax.f32 %v553_v37, 0.0  ;;  %v679_v43 = vpack.c.bf16 %v591_v33, %v589_v34  ;;  %v1893_v63 = vld [vmem:[%s3166_s3 + $0x8] sm:$0xf0]  ;;  %v3219_v33 = vld [vmem:[#allocation11_spill] sm:$0xff]  ;;  %v2020_v58 = vld [vmem:[%s3166_s3 + $0x14] sm:$0xf0] }
 0x10b   :  { %1236 = vmatpush.bf16.msrb.mxu0 %v683_v16  ;;  %v585_v23 = vmax.f32 %v3211_v56, 0.0  ;;  %v614_v15 = vmax.f32 %v425_v5, 0.0  ;;  %v416_v47 = vadd.f32 %v415_v51, %v3212_v26  ;;  %v692_v46 = vpack.c.bf16 %v618_v42, %v616_v19  ;;  %v3220_v37 = vld [vmem:[#allocation8_spill] sm:$0xff]  ;;  %v3224_v34 = vld [vmem:[#allocation7_spill] sm:$0xff]  ;;  %v1901_v51 = vld [vmem:[%s3166_s3 + $0x18] sm:$0xf0] }
 0x10c   :  { %1148 = vmatpush.bf16.msrb.mxu3 %v696_v8  ;;  %v544_v10 = vadd.f32 %v3213_v11, %v2773_v44  ;;  %v541_v17 = vadd.f32 %v3214_v0, %v2754_v48  ;;  %v623_v41 = vmax.f32 %v550_v29, 0.0  ;;  %v697_v60 = vpack.c.bf16 %v627_v59, %v625_v52  ;;  %v3217_v44 = vld [vmem:[#allocation13_spill] sm:$0xff]  ;;  %v3221_v42 = vld [vmem:[#allocation12_spill] sm:$0xff]  ;;  %v2021_v25 = vld [vmem:[%s3166_s3 + $0x24] sm:$0xf]  ;;  %v2859_v52 = vpop.permute.xlu2 %738 }
 0x10d   :  { %1324 = vmatpush.bf16.msrb.mxu1 %v701_v57  ;;  %v612_v30 = vmax.f32 %v422_v61, 0.0  ;;  %v419_v20 = vadd.f32 %v3215_v13, %v181_v3  ;;  %v621_v16 = vmax.f32 %v547_v32, 0.0  ;;  %v677_v62 = vpack.c.bf16 %v587_v27, %v585_v23  ;;  %v2019_v59 = vld [vmem:[%s3166_s3 + $0x14] sm:$0xf]  ;;  %v1909_v27 = vld [vmem:[%s3166_s3 + $0x28] sm:$0xf0] }
 0x10e   :  { %1059 = vmatpush.bf16.msrb.mxu2 %v680_v9  ;;  %v608_v39 = vmax.f32 %v416_v47, 0.0  ;;  %v619_v35 = vmax.f32 %v544_v10, 0.0  ;;  %v617_v40 = vmax.f32 %v541_v17, 0.0  ;;  %v538_v14 = vadd.f32 %v3217_v44, %v191_v7  ;;  %v1891_v7 = vld [vmem:[%s3166_s3] sm:$0xf] }
 0x10f   :  { %1237 = vmatpush.bf16.msrb.mxu0 %v681_v6  ;;  %v690_v8 = vpack.c.bf16 %v614_v15, %v612_v30  ;;  %v695_v48 = vpack.c.bf16 %v623_v41, %v621_v16  ;;  %v610_v57 = vmax.f32 %v419_v20, 0.0  ;;  %v535_v9 = vadd.f32 %v3218_v18, %v186_v2  ;;  %v3222_v2 = vld [vmem:[#allocation4_spill] sm:$0xff]  ;;  %v1907_v1 = vld [vmem:[%s3166_s3 + $0x20] sm:$0xf]  ;;  %v1917_v56 = vld [vmem:[%s3166_s3 + $0x38] sm:$0xf0]  ;;  %v2877_v11 = vpop.permute.xlu1 %748 }
 0x110   :  { %1149 = vmatpush.bf16.msrb.mxu3 %v694_v21  ;;  %v532_v28 = vadd.f32 %v3220_v37, %v181_v3  ;;  %v615_v6 = vmax.f32 %v538_v14, 0.0  ;;  %v693_v19 = vpack.c.bf16 %v619_v35, %v617_v40  ;;  %v1896_v54 = vor.u32 %v2017_v38, %v1893_v63  ;;  %v3223_v21 = vld [vmem:[#allocation5_spill] sm:$0xff]  ;;  %v2022_v22 = vld [vmem:[%s3166_s3 + $0x24] sm:$0xf0]  ;;  %v2024_v15 = vld [vmem:[%s3166_s3 + $0x34] sm:$0xf0] }
 0x111   :  { %1325 = vmatpush.bf16.msrb.mxu1 %v699_v45  ;;  %v688_v24 = vpack.c.bf16 %v610_v57, %v608_v39  ;;  %v529_v5 = vadd.f32 %v3222_v2, %v3212_v26  ;;  %v613_v31 = vmax.f32 %v535_v9, 0.0  ;;  %v1892_v36 = vor.u32 %v2018_v53, %v1891_v7  ;;  %v1899_v45 = vld [vmem:[%s3166_s3 + $0x10] sm:$0xf]  ;;  %v2873_v26 = vpop.permute.xlu0 %743  ;;  %v1925_v30 = vld [vmem:[%s3166_s3 + $0x48] sm:$0xf0] }
 0x112   :  { %1060 = vmatpush.bf16.msrb.mxu2 %v678_v4  ;;  %v611_v50 = vmax.f32 %v532_v28, 0.0  ;;  %v1904_v61 = vor.u32 %v2019_v59, %v1901_v51  ;;  %v1900_v4 = vor.u32 %v2020_v58, %v1899_v45  ;;  %v1912_v32 = vor.u32 %v2021_v25, %v1909_v27  ;;  %v1915_v23 = vld [vmem:[%s3166_s3 + $0x30] sm:$0xf]  ;;  %v1923_v13 = vld [vmem:[%s3166_s3 + $0x40] sm:$0xf] }
 0x113   :  { %1238 = vmatpush.bf16.msrb.mxu0 %v679_v43  ;;  %v691_v55 = vpack.c.bf16 %v615_v6, %v613_v31  ;;  %v609_v12 = vmax.f32 %v529_v5, 0.0  ;;  %v1908_v3 = vor.u32 %v2022_v22, %v1907_v1  ;;  %v2023_v43 = vld [vmem:[%s3166_s3 + $0x34] sm:$0xf]  ;;  %v1916_v10 = vor.u32 %v2024_v15, %v1915_v23  ;;  %v2026_v20 = vld [vmem:[%s3166_s3 + $0x44] sm:$0xf0] }
 0x114   :  { %1150 = vmatpush.bf16.msrb.mxu3 %v692_v46  ;;  %v1920_v47 = vor.u32 %v2023_v43, %v1917_v56  ;;  %v2875_v46 = vpop.permute.xlu2 %753  ;;  %v2027_v35 = vld [vmem:[%s3166_s3 + $0x54] sm:$0xf]  ;;  %v1933_v40 = vld [vmem:[%s3166_s3 + $0x58] sm:$0xf0]  ;;  %v2028_v57 = vld [vmem:[%s3166_s3 + $0x54] sm:$0xf0] }
 0x115   :  { %1326 = vmatpush.bf16.msrb.mxu1 %v697_v60  ;;  %v689_v29 = vpack.c.bf16 %v611_v50, %v609_v12  ;;  %v2025_v60 = vld [vmem:[%s3166_s3 + $0x44] sm:$0xf]  ;;  %v1936_v63 = vor.u32 %v2027_v35, %v1933_v40  ;;  %v1941_v53 = vld [vmem:[%s3166_s3 + $0x68] sm:$0xf0]  ;;  %v1939_v37 = vld [vmem:[%s3166_s3 + $0x60] sm:$0xf] }
 0x116   :  { %1061 = vmatpush.bf16.msrb.mxu2 %v3216_v49  ;;  %v1928_v16 = vor.u32 %v2025_v60, %v1925_v30  ;;  %v2029_v7 = vld [vmem:[%s3166_s3 + $0x64] sm:$0xf]  ;;  %v2030_v28 = vld [vmem:[%s3166_s3 + $0x64] sm:$0xf0]  ;;  %v2035_v35 = vld [vmem:[%s3166_s3 + $0x94] sm:$0xf] }
 0x117   :  { %1239 = vmatpush.bf16.msrb.mxu0 %v677_v62  ;;  %v2883_v41 = vpop.permute.xlu1 %763  ;;  %v1924_v62 = vor.u32 %v2026_v20, %v1923_v13  ;;  %v1944_v6 = vor.u32 %v2029_v7, %v1941_v53  ;;  %v2033_v58 = vld [vmem:[%s3166_s3 + $0x84] sm:$0xf]  ;;  %v2034_v25 = vld [vmem:[%s3166_s3 + $0x84] sm:$0xf0]  ;;  %v1965_v40 = vld [vmem:[%s3166_s3 + $0x98] sm:$0xf0] }
 0x118   :  { %1151 = vmatpush.bf16.msrb.mxu3 %v690_v8 }
 0x119   :  { %1327 = vmatpush.bf16.msrb.mxu1 %v695_v48  ;;  %v2879_v0 = vpop.permute.xlu0 %758  ;;  %v1931_v48 = vld [vmem:[%s3166_s3 + $0x50] sm:$0xf] }
 0x11a   :  { %1062 = vmatpush.bf16.msrb.mxu2 %v3219_v33  ;;  %v1932_v18 = vor.u32 %v2028_v57, %v1931_v48  ;;  %v2036_v57 = vld [vmem:[%s3166_s3 + $0x94] sm:$0xf0] }
 0x11b   :  { %1240 = vmatpush.bf16.msrb.mxu0 %v3221_v42 }
 0x11c   :  { %1152 = vmatpush.bf16.msrb.mxu3 %v688_v24  ;;  %v2881_v17 = vpop.permute.xlu2 %768 }
 0x11d   :  { %1328 = vmatpush.bf16.msrb.mxu1 %v693_v19  ;;  %v1940_v19 = vor.u32 %v2030_v28, %v1939_v37 }
 0x11e   :  { %1063 = vmatpush.bf16.msrb.mxu2 %v3223_v21  ;;  %v1949_v21 = vld [vmem:[%s3166_s3 + $0x78] sm:$0xf0] }
 0x11f   :  { %1241 = vmatpush.bf16.msrb.mxu0 %v3224_v34  ;;  %1153 = vmatmul.bf16.vlgmr.msrb.gmra.mxu3 %v1896_v54  ;;  %v2901_v8 = vpop.permute.xlu1 %778  ;;  %v1947_v34 = vld [vmem:[%s3166_s3 + $0x70] sm:$0xf] }
 0x121   :  { %1329 = vmatpush.bf16.msrb.mxu1 %v691_v55  ;;  %1064 = vmatmul.bf16.vlgmr.msrb.gmra.mxu2 %v1892_v36  ;;  %v2897_v39 = vpop.permute.xlu0 %773  ;;  %v2032_v55 = vld [vmem:[%s3166_s3 + $0x74] sm:$0xf0] }
 0x122   :  { %1242 = vmatmul.bf16.vlgmr.msrb.gmra.mxu0 %v1892_v36  ;;  %v2031_v36 = vld [vmem:[%s3166_s3 + $0x74] sm:$0xf] }
 0x123   :  { %v1952_v12 = vor.u32 %v2031_v36, %v1949_v21 }
 0x124   :  { %v2899_v49 = vpop.permute.xlu2 %783 }
 0x125   :  { %1330 = vmatpush.bf16.msrb.mxu1 %v689_v29  ;;  %v1948_v29 = vor.u32 %v2032_v55, %v1947_v34 }
 0x127   :  { %v2919_v38 = vpop.permute.xlu1 %793 }
 0x128   :  { %1331 = vmatmul.bf16.vlgmr.msrb.gmra.mxu1 %v1896_v54 }
 0x129   :  { %v2909_v44 = vpop.permute.xlu0 %788 }
 0x12c   :  { %v2911_v14 = vpop.permute.xlu2 %798 }
 0x12f   :  { %1158 = vmatmul.bf16.gmra.mxu3 %v1904_v61  ;;  %v2925_v24 = vpop.permute.xlu1 %808 }
 0x131   :  { %1069 = vmatmul.bf16.gmra.mxu2 %v1900_v4  ;;  %v2921_v9 = vpop.permute.xlu0 %803 }
 0x132   :  { %1247 = vmatmul.bf16.gmra.mxu0 %v1900_v4  ;;  %v1955_v4 = vld [vmem:[%s3166_s3 + $0x80] sm:$0xf] }
 0x134   :  { %v2923_v33 = vpop.permute.xlu2 %813 }
 0x137   :  { %v2943_v2 = vpop.permute.xlu1 %823 }
 0x138   :  { %1336 = vmatmul.bf16.gmra.mxu1 %v1904_v61  ;;  %v1957_v61 = vld [vmem:[%s3166_s3 + $0x88] sm:$0xf0] }
 0x139   :  { %v2939_v42 = vpop.permute.xlu0 %818  ;;  %v1960_v1 = vor.u32 %v2033_v58, %v1957_v61 }
 0x13c   :  { %v2941_v54 = vpop.permute.xlu2 %828 }
 0x13f   :  { %1163 = vmatmul.bf16.gmra.mxu3 %v1912_v32  ;;  %v2955_v50 = vpop.permute.xlu1 %838 }
 0x141   :  { %1074 = vmatmul.bf16.gmra.mxu2 %v1908_v3  ;;  %v2945_v5 = vpop.permute.xlu0 %833 }
 0x142   :  { %1252 = vmatmul.bf16.gmra.mxu0 %v1908_v3  ;;  %v1956_v3 = vor.u32 %v2034_v25, %v1955_v4 }
 0x144   :  { %v2947_v31 = vpop.permute.xlu2 %843 }
 0x147   :  { %v2967_v45 = vpop.permute.xlu1 %853 }
 0x148   :  { %1341 = vmatmul.bf16.gmra.mxu1 %v1912_v32 }
 0x149   :  { %v2963_v59 = vpop.permute.xlu0 %848 }
 0x14c   :  { %v2965_v51 = vpop.permute.xlu2 %858 }
 0x14f   :  { %1168 = vmatmul.bf16.gmra.mxu3 %v1920_v47  ;;  %v2985_v32 = vpop.permute.xlu1 %868 }
 0x151   :  { %1079 = vmatmul.bf16.gmra.mxu2 %v1916_v10  ;;  %v2981_v27 = vpop.permute.xlu0 %863 }
 0x152   :  { %1257 = vmatmul.bf16.gmra.mxu0 %v1916_v10 }
 0x154   :  { %v2983_v22 = vpop.permute.xlu2 %873 }
 0x157   :  { %v2993_v20 = vpop.permute.xlu1 %883 }
 0x158   :  { %1346 = vmatmul.bf16.gmra.mxu1 %v1920_v47 }
 0x159   :  { %v2988_v47 = vpop.permute.xlu0 %878 }
 0x15c   :  { %v2991_v30 = vpop.permute.xlu2 %888 }
 0x15f   :  { %1173 = vmatmul.bf16.gmra.mxu3 %v1928_v16  ;;  %v1511_v58 = vpop.permute.xlu1 %1510 }
 0x161   :  { %1084 = vmatmul.bf16.gmra.mxu2 %v1924_v62  ;;  %v3009_v36 = vpop.permute.xlu0 %893 }
 0x162   :  { %1262 = vmatmul.bf16.gmra.mxu0 %v1924_v62 }
 0x168   :  { %1351 = vmatmul.bf16.gmra.mxu1 %v1928_v16 }
 0x16f   :  { %1178 = vmatmul.bf16.gmra.mxu3 %v1936_v63 }
 0x171   :  { %1089 = vmatmul.bf16.gmra.mxu2 %v1932_v18 }
 0x172   :  { %1267 = vmatmul.bf16.gmra.mxu0 %v1932_v18 }
 0x178   :  { %1356 = vmatmul.bf16.gmra.mxu1 %v1936_v63  ;;  %v1968_v63 = vor.u32 %v2035_v35, %v1965_v40  ;;  %v2037_v40 = vld [vmem:[%s3166_s3 + $0xa4] sm:$0xf] }
 0x17f   :  { %1183 = vmatmul.bf16.gmra.mxu3 %v1944_v6 }
 0x181   :  { %1094 = vmatmul.bf16.gmra.mxu2 %v1940_v19 }
 0x182   :  { %1272 = vmatmul.bf16.gmra.mxu0 %v1940_v19 }
 0x188   :  { %1361 = vmatmul.bf16.gmra.mxu1 %v1944_v6 }
 0x18f   :  { %1188 = vmatmul.bf16.gmra.mxu3 %v1952_v12 }
 0x191   :  { %1099 = vmatmul.bf16.gmra.mxu2 %v1948_v29 }
 0x192   :  { %1277 = vmatmul.bf16.gmra.mxu0 %v1948_v29  ;;  %v1516_v29 = vpop.permute.xlu2 %1515 }
 0x198   :  { %1366 = vmatmul.bf16.gmra.mxu1 %v1952_v12 }
 0x19f   :  { %v1243_v43 = vpop.f32.mrf.mxu0  ;;  %1193 = vmatmul.bf16.gmra.mxu3 %v1960_v1 }
 0x1a0   :  { %v1244_v23 = vadd.f32 %v1243_v43, %v2859_v52 }
 0x1a1   :  { %1104 = vmatmul.bf16.gmra.mxu2 %v1956_v3 }
 0x1a2   :  { %1282 = vmatmul.bf16.gmra.mxu0 %v1956_v3  ;;  %v1154_v56 = vpop.f32.mrf.mxu3 }
 0x1a4   :  { %v1065_v15 = vpop.f32.mrf.mxu2 }
 0x1a5   :  { %v1066_v10 = vadd.f32 %v1065_v15, %v2859_v52  ;;  %v1332_v60 = vpop.f32.mrf.mxu1  ;;  %v1963_v52 = vld [vmem:[%s3166_s3 + $0x90] sm:$0xf] }
 0x1a6   :  { %v1333_v13 = vadd.f32 %v1332_v60, %v1244_v23  ;;  %v1964_v28 = vor.u32 %v2036_v57, %v1963_v52  ;;  %v1521_v52 = vpop.permute.xlu0 %1520 }
 0x1a7   :  { %v1155_v16 = vadd.f32 %v1154_v56, %v1066_v10  ;;  %v1245_v62 = vpop.f32.mrf.mxu0 }
 0x1a8   :  { %1371 = vmatmul.bf16.gmra.mxu1 %v1960_v1  ;;  %v1246_v18 = vadd.f32 %v1245_v62, %v2873_v26  ;;  %v1413_v6 = vmax.f32 %v1333_v13, 0.0 }
 0x1a9   :  { %v1412_v21 = vmax.f32 %v1155_v16, 0.0 }
 0x1aa   :  { %v1156_v48 = vpop.f32.mrf.mxu3  ;;  %v1669_v4 = vmul.f32 %v1511_v58, %v1413_v6 }
 0x1ac   :  { %v1067_v7 = vpop.f32.mrf.mxu2 }
 0x1ad   :  { %v1068_v53 = vadd.f32 %v1067_v7, %v2873_v26  ;;  %v1334_v37 = vpop.f32.mrf.mxu1  ;;  %v1668_v26 = vmul.f32 %v1511_v58, %v1412_v21 }
 0x1ae   :  { %v1335_v19 = vadd.f32 %v1334_v37, %v1246_v18 }
 0x1af   :  { %v1157_v34 = vadd.f32 %v1156_v48, %v1068_v53  ;;  %v1248_v55 = vpop.f32.mrf.mxu0  ;;  %1198 = vmatmul.bf16.gmra.mxu3 %v1968_v63  ;;  %v1973_v48 = vld [vmem:[%s3166_s3 + $0xa8] sm:$0xf0] }
 0x1b0   :  { %v1415_v12 = vmax.f32 %v1335_v19, 0.0  ;;  %v1249_v56 = vadd.f32 %v1248_v55, %v2877_v11  ;;  %v1976_v37 = vor.u32 %v2037_v40, %v1973_v48  ;;  %v2039_v40 = vld [vmem:[%s3166_s3 + $0xb4] sm:$0xf]  ;;  %v1981_v48 = vld [vmem:[%s3166_s3 + $0xb8] sm:$0xf0] }
 0x1b1   :  { %v1414_v61 = vmax.f32 %v1157_v34, 0.0  ;;  %1109 = vmatmul.bf16.gmra.mxu2 %v1964_v28 }
 0x1b2   :  { %v1671_v25 = vmul.f32 %v1516_v29, %v1415_v12  ;;  %1287 = vmatmul.bf16.gmra.mxu0 %v1964_v28  ;;  %v1159_v1 = vpop.f32.mrf.mxu3 }
 0x1b3   :  { %v1670_v3 = vmul.f32 %v1516_v29, %v1414_v61 }
 0x1b4   :  { %v1769_v43 = vadd.f32 %v1671_v25, %v1669_v4  ;;  %v1070_v23 = vpop.f32.mrf.mxu2  ;;  %v1526_v25 = vpop.permute.xlu1 %1525 }
 0x1b5   :  { %v1732_v15 = vadd.f32 %v1670_v3, %v1668_v26  ;;  %v1071_v10 = vadd.f32 %v1070_v23, %v2877_v11  ;;  %v1337_v60 = vpop.f32.mrf.mxu1  ;;  %v1971_v11 = vld [vmem:[%s3166_s3 + $0xa0] sm:$0xf] }
 0x1b6   :  { %v1338_v13 = vadd.f32 %v1337_v60, %v1249_v56 }
 0x1b7   :  { %v1160_v16 = vadd.f32 %v1159_v1, %v1071_v10  ;;  %v1250_v62 = vpop.f32.mrf.mxu0 }
 0x1b8   :  { %v1417_v35 = vmax.f32 %v1338_v13, 0.0  ;;  %1376 = vmatmul.bf16.gmra.mxu1 %v1968_v63  ;;  %v2038_v63 = vld [vmem:[%s3166_s3 + $0xa4] sm:$0xf0]  ;;  %v1251_v6 = vadd.f32 %v1250_v62, %v2875_v46 }
 0x1b9   :  { %v1416_v57 = vmax.f32 %v1160_v16, 0.0  ;;  %v1972_v12 = vor.u32 %v2038_v63, %v1971_v11  ;;  %v2040_v11 = vld [vmem:[%s3166_s3 + $0xb4] sm:$0xf0] }
 0x1ba   :  { %v1673_v18 = vmul.f32 %v1521_v52, %v1417_v35  ;;  %v1161_v7 = vpop.f32.mrf.mxu3 }
 0x1bb   :  { %v1672_v53 = vmul.f32 %v1521_v52, %v1416_v57  ;;  %v1531_v52 = vpop.permute.xlu2 %1530 }
 0x1bc   :  { %v1770_v28 = vadd.f32 %v1769_v43, %v1673_v18  ;;  %v1072_v19 = vpop.f32.mrf.mxu2 }
 0x1bd   :  { %v1733_v21 = vadd.f32 %v1732_v15, %v1672_v53  ;;  %v1073_v34 = vadd.f32 %v1072_v19, %v2875_v46  ;;  %v1339_v55 = vpop.f32.mrf.mxu1  ;;  %v1984_v53 = vor.u32 %v2039_v40, %v1981_v48  ;;  %v1541_v40 = vpop.permute.xlu1 %1540 }
 0x1be   :  { %v1340_v29 = vadd.f32 %v1339_v55, %v1251_v6 }
 0x1bf   :  { %v1162_v58 = vadd.f32 %v1161_v7, %v1073_v34  ;;  %v1253_v61 = vpop.f32.mrf.mxu0  ;;  %1203 = vmatmul.bf16.gmra.mxu3 %v1976_v37 }
 0x1c0   :  { %v1419_v4 = vmax.f32 %v1340_v29, 0.0  ;;  %v1254_v23 = vadd.f32 %v1253_v61, %v2879_v0 }
 0x1c1   :  { %v1418_v1 = vmax.f32 %v1162_v58, 0.0  ;;  %1114 = vmatmul.bf16.gmra.mxu2 %v1972_v12 }
 0x1c2   :  { %v1675_v26 = vmul.f32 %v1526_v25, %v1419_v4  ;;  %1292 = vmatmul.bf16.gmra.mxu0 %v1972_v12  ;;  %v1164_v3 = vpop.f32.mrf.mxu3  ;;  %v1536_v4 = vpop.permute.xlu0 %1535 }
 0x1c3   :  { %v1674_v43 = vmul.f32 %v1526_v25, %v1418_v1 }
 0x1c4   :  { %v1771_v56 = vadd.f32 %v1770_v28, %v1675_v26  ;;  %v1075_v15 = vpop.f32.mrf.mxu2 }
 0x1c5   :  { %v1734_v10 = vadd.f32 %v1733_v21, %v1674_v43  ;;  %v1076_v46 = vadd.f32 %v1075_v15, %v2879_v0  ;;  %v1342_v60 = vpop.f32.mrf.mxu1  ;;  %v1979_v0 = vld [vmem:[%s3166_s3 + $0xb0] sm:$0xf] }
 0x1c6   :  { %v1343_v13 = vadd.f32 %v1342_v60, %v1254_v23  ;;  %v1980_v55 = vor.u32 %v2040_v11, %v1979_v0 }
 0x1c7   :  { %v1165_v16 = vadd.f32 %v1164_v3, %v1076_v46  ;;  %v1255_v62 = vpop.f32.mrf.mxu0 }
 0x1c8   :  { %v1421_v35 = vmax.f32 %v1343_v13, 0.0  ;;  %1381 = vmatmul.bf16.gmra.mxu1 %v1976_v37  ;;  %v1256_v28 = vadd.f32 %v1255_v62, %v2883_v41  ;;  %v2041_v62 = vld [vmem:[%s3166_s3 + $0xc4] sm:$0xf] }
 0x1c9   :  { %v1420_v57 = vmax.f32 %v1165_v16, 0.0 }
 0x1ca   :  { %v1677_v18 = vmul.f32 %v1531_v52, %v1421_v35  ;;  %v1166_v7 = vpop.f32.mrf.mxu3  ;;  %v1989_v35 = vld [vmem:[%s3166_s3 + $0xc8] sm:$0xf0] }
 0x1cb   :  { %v1676_v63 = vmul.f32 %v1531_v52, %v1420_v57  ;;  %v1992_v0 = vor.u32 %v2041_v62, %v1989_v35 }
 0x1cc   :  { %v1772_v37 = vadd.f32 %v1771_v56, %v1677_v18  ;;  %v1077_v6 = vpop.f32.mrf.mxu2  ;;  %v2042_v18 = vld [vmem:[%s3166_s3 + $0xc4] sm:$0xf0] }
 0x1cd   :  { %v1735_v19 = vadd.f32 %v1734_v10, %v1676_v63  ;;  %v1078_v21 = vadd.f32 %v1077_v6, %v2883_v41  ;;  %v1344_v34 = vpop.f32.mrf.mxu1 }
 0x1ce   :  { %v1345_v12 = vadd.f32 %v1344_v34, %v1256_v28 }
 0x1cf   :  { %v1167_v29 = vadd.f32 %v1166_v7, %v1078_v21  ;;  %v1258_v58 = vpop.f32.mrf.mxu0  ;;  %1208 = vmatmul.bf16.gmra.mxu3 %v1984_v53 }
 0x1d0   :  { %v1423_v61 = vmax.f32 %v1345_v12, 0.0  ;;  %v1259_v56 = vadd.f32 %v1258_v58, %v2881_v17 }
 0x1d1   :  { %v1422_v25 = vmax.f32 %v1167_v29, 0.0  ;;  %1119 = vmatmul.bf16.gmra.mxu2 %v1980_v55  ;;  %v1546_v29 = vpop.permute.xlu2 %1545 }
 0x1d2   :  { %v1679_v1 = vmul.f32 %v1536_v4, %v1423_v61  ;;  %1297 = vmatmul.bf16.gmra.mxu0 %v1980_v55  ;;  %v1169_v26 = vpop.f32.mrf.mxu3 }
 0x1d3   :  { %v1678_v3 = vmul.f32 %v1536_v4, %v1422_v25 }
 0x1d4   :  { %v1773_v43 = vadd.f32 %v1772_v37, %v1679_v1  ;;  %v1080_v23 = vpop.f32.mrf.mxu2 }
 0x1d5   :  { %v1736_v15 = vadd.f32 %v1735_v19, %v1678_v3  ;;  %v1081_v41 = vadd.f32 %v1080_v23, %v2881_v17  ;;  %v1347_v10 = vpop.f32.mrf.mxu1  ;;  %v1987_v17 = vld [vmem:[%s3166_s3 + $0xc0] sm:$0xf] }
 0x1d6   :  { %v1348_v46 = vadd.f32 %v1347_v10, %v1259_v56  ;;  %v1988_v19 = vor.u32 %v2042_v18, %v1987_v17 }
 0x1d7   :  { %v1170_v60 = vadd.f32 %v1169_v26, %v1081_v41  ;;  %v1260_v13 = vpop.f32.mrf.mxu0 }
 0x1d8   :  { %v1425_v16 = vmax.f32 %v1348_v46, 0.0  ;;  %1386 = vmatmul.bf16.gmra.mxu1 %v1984_v53  ;;  %v1261_v63 = vadd.f32 %v1260_v13, %v2897_v39  ;;  %v2043_v46 = vld [vmem:[%s3166_s3 + $0xd4] sm:$0xf]  ;;  %v1551_v13 = vpop.permute.xlu0 %1550 }
 0x1d9   :  { %v1424_v48 = vmax.f32 %v1170_v60, 0.0  ;;  %v1997_v60 = vld [vmem:[%s3166_s3 + $0xd8] sm:$0xf0] }
 0x1da   :  { %v1681_v52 = vmul.f32 %v1541_v40, %v1425_v16  ;;  %v1171_v57 = vpop.f32.mrf.mxu3 }
 0x1db   :  { %v1680_v7 = vmul.f32 %v1541_v40, %v1424_v48  ;;  %v2044_v40 = vld [vmem:[%s3166_s3 + $0xd4] sm:$0xf0] }
 0x1dc   :  { %v1774_v11 = vadd.f32 %v1773_v43, %v1681_v52  ;;  %v1082_v53 = vpop.f32.mrf.mxu2  ;;  %v2000_v52 = vor.u32 %v2043_v46, %v1997_v60  ;;  %v2046_v46 = vld [vmem:[%s3166_s3 + $0xe4] sm:$0xf0] }
 0x1dd   :  { %v1737_v37 = vadd.f32 %v1736_v15, %v1680_v7  ;;  %v1083_v28 = vadd.f32 %v1082_v53, %v2897_v39  ;;  %v1349_v6 = vpop.f32.mrf.mxu1 }
 0x1de   :  { %v1350_v21 = vadd.f32 %v1349_v6, %v1261_v63 }
 0x1df   :  { %v1172_v34 = vadd.f32 %v1171_v57, %v1083_v28  ;;  %v1263_v55 = vpop.f32.mrf.mxu0  ;;  %1213 = vmatmul.bf16.gmra.mxu3 %v1992_v0 }
 0x1e0   :  { %v1427_v12 = vmax.f32 %v1350_v21, 0.0  ;;  %v1264_v26 = vadd.f32 %v1263_v55, %v2901_v8 }
 0x1e1   :  { %v1426_v58 = vmax.f32 %v1172_v34, 0.0  ;;  %1124 = vmatmul.bf16.gmra.mxu2 %v1988_v19 }
 0x1e2   :  { %v1683_v61 = vmul.f32 %v1546_v29, %v1427_v12  ;;  %1302 = vmatmul.bf16.gmra.mxu0 %v1988_v19  ;;  %v1174_v4 = vpop.f32.mrf.mxu3  ;;  %v1556_v19 = vpop.permute.xlu1 %1555 }
 0x1e3   :  { %v1682_v25 = vmul.f32 %v1546_v29, %v1426_v58 }
 0x1e4   :  { %v1775_v1 = vadd.f32 %v1774_v11, %v1683_v61  ;;  %v1085_v3 = vpop.f32.mrf.mxu2 }
 0x1e5   :  { %v1738_v43 = vadd.f32 %v1737_v37, %v1682_v25  ;;  %v1086_v39 = vadd.f32 %v1085_v3, %v2901_v8  ;;  %v1352_v56 = vpop.f32.mrf.mxu1  ;;  %v1995_v8 = vld [vmem:[%s3166_s3 + $0xd0] sm:$0xf] }
 0x1e6   :  { %v1353_v23 = vadd.f32 %v1352_v56, %v1264_v26  ;;  %v1996_v63 = vor.u32 %v2044_v40, %v1995_v8  ;;  %v2005_v56 = vld [vmem:[%s3166_s3 + $0xe8] sm:$0xf0] }
 0x1e7   :  { %v1175_v15 = vadd.f32 %v1174_v4, %v1086_v39  ;;  %v1265_v41 = vpop.f32.mrf.mxu0  ;;  %v2045_v39 = vld [vmem:[%s3166_s3 + $0xe4] sm:$0xf] }
 0x1e8   :  { %v1429_v10 = vmax.f32 %v1353_v23, 0.0  ;;  %1391 = vmatmul.bf16.gmra.mxu1 %v1992_v0  ;;  %v1266_v17 = vadd.f32 %v1265_v41, %v2899_v49  ;;  %v1561_v23 = vpop.permute.xlu2 %1560 }
 0x1e9   :  { %v1428_v16 = vmax.f32 %v1175_v15, 0.0 }
 0x1ea   :  { %v1685_v62 = vmul.f32 %v1551_v13, %v1429_v10  ;;  %v1176_v35 = vpop.f32.mrf.mxu3 }
 0x1eb   :  { %v1684_v48 = vmul.f32 %v1551_v13, %v1428_v16  ;;  %v2008_v13 = vor.u32 %v2045_v39, %v2005_v56 }
 0x1ec   :  { %v1776_v57 = vadd.f32 %v1775_v1, %v1685_v62  ;;  %v1087_v18 = vpop.f32.mrf.mxu2 }
 0x1ed   :  { %v1739_v7 = vadd.f32 %v1738_v43, %v1684_v48  ;;  %v1088_v0 = vadd.f32 %v1087_v18, %v2899_v49  ;;  %v1354_v11 = vpop.f32.mrf.mxu1 }
 0x1ee   :  { %v1355_v53 = vadd.f32 %v1354_v11, %v1266_v17 }
 0x1ef   :  { %v1177_v37 = vadd.f32 %v1176_v35, %v1088_v0  ;;  %v1268_v28 = vpop.f32.mrf.mxu0  ;;  %1218 = vmatmul.bf16.gmra.mxu3 %v2000_v52  ;;  %v1566_v0 = vpop.permute.xlu0 %1565 }
 0x1f0   :  { %v1431_v6 = vmax.f32 %v1355_v53, 0.0  ;;  %v1269_v58 = vadd.f32 %v1268_v28, %v2909_v44 }
 0x1f1   :  { %v1430_v21 = vmax.f32 %v1177_v37, 0.0  ;;  %1129 = vmatmul.bf16.gmra.mxu2 %v1996_v63 }
 0x1f2   :  { %v1687_v34 = vmul.f32 %v1556_v19, %v1431_v6  ;;  %1307 = vmatmul.bf16.gmra.mxu0 %v1996_v63  ;;  %v1179_v55 = vpop.f32.mrf.mxu3 }
 0x1f3   :  { %v1686_v12 = vmul.f32 %v1556_v19, %v1430_v21 }
 0x1f4   :  { %v1777_v29 = vadd.f32 %v1776_v57, %v1687_v34  ;;  %v1090_v61 = vpop.f32.mrf.mxu2 }
 0x1f5   :  { %v1740_v4 = vadd.f32 %v1739_v7, %v1686_v12  ;;  %v1091_v49 = vadd.f32 %v1090_v61, %v2909_v44  ;;  %v1357_v25 = vpop.f32.mrf.mxu1  ;;  %v2003_v44 = vld [vmem:[%s3166_s3 + $0xe0] sm:$0xf]  ;;  %v2047_v61 = vld [vmem:[%s3166_s3 + $0xf4] sm:$0xf] }
 0x1f6   :  { %v1358_v1 = vadd.f32 %v1357_v25, %v1269_v58 }
 0x1f7   :  { %v1180_v26 = vadd.f32 %v1179_v55, %v1091_v49  ;;  %v1270_v3 = vpop.f32.mrf.mxu0  ;;  %v1571_v49 = vpop.permute.xlu1 %1570 }
 0x1f8   :  { %v1433_v43 = vmax.f32 %v1358_v1, 0.0  ;;  %1396 = vmatmul.bf16.gmra.mxu1 %v2000_v52  ;;  %v1271_v62 = vadd.f32 %v1270_v3, %v2919_v38  ;;  %v2004_v52 = vor.u32 %v2046_v46, %v2003_v44  ;;  %v2048_v3 = vld [vmem:[%s3166_s3 + $0xf4] sm:$0xf0] }
 0x1f9   :  { %v1432_v15 = vmax.f32 %v1180_v26, 0.0 }
 0x1fa   :  { %v1689_v41 = vmul.f32 %v1561_v23, %v1433_v43  ;;  %v1181_v10 = vpop.f32.mrf.mxu3 }
 0x1fb   :  { %v1688_v60 = vmul.f32 %v1561_v23, %v1432_v15 }
 0x1fc   :  { %v1778_v16 = vadd.f32 %v1777_v29, %v1689_v41  ;;  %v1092_v35 = vpop.f32.mrf.mxu2 }
 0x1fd   :  { %v1741_v8 = vadd.f32 %v1740_v4, %v1688_v60  ;;  %v1093_v40 = vadd.f32 %v1092_v35, %v2919_v38  ;;  %v1359_v48 = vpop.f32.mrf.mxu1  ;;  %v2013_v4 = vld [vmem:[%s3166_s3 + $0xf8] sm:$0xf0]  ;;  %v1576_v35 = vpop.permute.xlu2 %1575 }
 0x1fe   :  { %v1360_v57 = vadd.f32 %v1359_v48, %v1271_v62  ;;  %v2016_v39 = vor.u32 %v2047_v61, %v2013_v4 }
 0x1ff   :  { %v1182_v17 = vadd.f32 %v1181_v10, %v1093_v40  ;;  %v1273_v18 = vpop.f32.mrf.mxu0  ;;  %1223 = vmatmul.bf16.gmra.mxu3 %v2008_v13 }
 0x200   :  { %v1435_v7 = vmax.f32 %v1360_v57, 0.0  ;;  %v1274_v6 = vadd.f32 %v1273_v18, %v2911_v14 }
 0x201   :  { %v1434_v11 = vmax.f32 %v1182_v17, 0.0  ;;  %1134 = vmatmul.bf16.gmra.mxu2 %v2004_v52 }
 0x202   :  { %v1691_v63 = vmul.f32 %v1566_v0, %v1435_v7  ;;  %1312 = vmatmul.bf16.gmra.mxu0 %v2004_v52  ;;  %v1184_v53 = vpop.f32.mrf.mxu3 }
 0x203   :  { %v1690_v37 = vmul.f32 %v1566_v0, %v1434_v11 }
 0x204   :  { %v1779_v28 = vadd.f32 %v1778_v16, %v1691_v63  ;;  %v1095_v19 = vpop.f32.mrf.mxu2 }
 0x205   :  { %v1742_v21 = vadd.f32 %v1741_v8, %v1690_v37  ;;  %v1096_v38 = vadd.f32 %v1095_v19, %v2911_v14  ;;  %v1362_v34 = vpop.f32.mrf.mxu1  ;;  %v2011_v14 = vld [vmem:[%s3166_s3 + $0xf0] sm:$0xf] }
 0x206   :  { %v1363_v55 = vadd.f32 %v1362_v34, %v1274_v6  ;;  %v2012_v46 = vor.u32 %v2048_v3, %v2011_v14 }
 0x207   :  { %v1185_v12 = vadd.f32 %v1184_v53, %v1096_v38  ;;  %v1275_v29 = vpop.f32.mrf.mxu0 }
 0x208   :  { %v1437_v58 = vmax.f32 %v1363_v55, 0.0  ;;  %1401 = vmatmul.bf16.gmra.mxu1 %v2008_v13  ;;  %v1276_v23 = vadd.f32 %v1275_v29, %v2921_v9 }
 0x209   :  { %v1436_v25 = vmax.f32 %v1185_v12, 0.0 }
 0x20a   :  { %v1693_v1 = vmul.f32 %v1571_v49, %v1437_v58  ;;  %v1186_v26 = vpop.f32.mrf.mxu3 }
 0x20b   :  { %v1692_v43 = vmul.f32 %v1571_v49, %v1436_v25 }
 0x20c   :  { %v1780_v56 = vadd.f32 %v1779_v28, %v1693_v1  ;;  %v1097_v15 = vpop.f32.mrf.mxu2  ;;  %v1581_v28 = vpop.permute.xlu0 %1580 }
 0x20d   :  { %v1743_v41 = vadd.f32 %v1742_v21, %v1692_v43  ;;  %v1098_v10 = vadd.f32 %v1097_v15, %v2921_v9  ;;  %v1364_v44 = vpop.f32.mrf.mxu1  ;;  %v1586_v1 = vpop.permute.xlu1 %1585 }
 0x20e   :  { %v1365_v60 = vadd.f32 %v1364_v44, %v1276_v23 }
 0x20f   :  { %v1187_v13 = vadd.f32 %v1186_v26, %v1098_v10  ;;  %v1278_v16 = vpop.f32.mrf.mxu0  ;;  %1228 = vmatmul.bf16.gmra.mxu3 %v2016_v39 }
 0x210   :  { %v1439_v62 = vmax.f32 %v1365_v60, 0.0  ;;  %v1279_v17 = vadd.f32 %v1278_v16, %v2925_v24 }
 0x211   :  { %v1438_v8 = vmax.f32 %v1187_v13, 0.0  ;;  %1139 = vmatmul.bf16.gmra.mxu2 %v2012_v46  ;;  %v1591_v13 = vpop.permute.xlu2 %1590 }
 0x212   :  { %v1695_v40 = vmul.f32 %v1576_v35, %v1439_v62  ;;  %1317 = vmatmul.bf16.gmra.mxu0 %v2012_v46  ;;  %v1189_v48 = vpop.f32.mrf.mxu3 }
 0x213   :  { %v1694_v52 = vmul.f32 %v1576_v35, %v1438_v8 }
 0x214   :  { %v1781_v57 = vadd.f32 %v1780_v56, %v1695_v40  ;;  %v1100_v18 = vpop.f32.mrf.mxu2 }
 0x215   :  { %v1744_v7 = vadd.f32 %v1743_v41, %v1694_v52  ;;  %v1101_v9 = vadd.f32 %v1100_v18, %v2925_v24  ;;  %v1367_v0 = vpop.f32.mrf.mxu1 }
 0x216   :  { %v1368_v11 = vadd.f32 %v1367_v0, %v1279_v17 }
 0x217   :  { %v1190_v63 = vadd.f32 %v1189_v48, %v1101_v9  ;;  %v1280_v53 = vpop.f32.mrf.mxu0 }
 0x218   :  { %v1441_v37 = vmax.f32 %v1368_v11, 0.0  ;;  %1406 = vmatmul.bf16.gmra.mxu1 %v2016_v39  ;;  %v1281_v55 = vadd.f32 %v1280_v53, %v2923_v33  ;;  %v1596_v11 = vpop.permute.xlu0 %1595 }
 0x219   :  { %v1440_v6 = vmax.f32 %v1190_v63, 0.0 }
 0x21a   :  { %v1697_v19 = vmul.f32 %v1581_v28, %v1441_v37  ;;  %v1191_v21 = vpop.f32.mrf.mxu3 }
 0x21b   :  { %v1696_v38 = vmul.f32 %v1581_v28, %v1440_v6 }
 0x21c   :  { %v1782_v34 = vadd.f32 %v1781_v57, %v1697_v19  ;;  %v1102_v12 = vpop.f32.mrf.mxu2 }
 0x21d   :  { %v1745_v29 = vadd.f32 %v1744_v7, %v1696_v38  ;;  %v1103_v58 = vadd.f32 %v1102_v12, %v2923_v33  ;;  %v1369_v61 = vpop.f32.mrf.mxu1 }
 0x21e   :  { %v1370_v24 = vadd.f32 %v1369_v61, %v1281_v55  ;;  %v1601_v61 = vpop.permute.xlu1 %1600 }
 0x21f   :  { %v1192_v4 = vadd.f32 %v1191_v21, %v1103_v58  ;;  %v1283_v49 = vpop.f32.mrf.mxu0 }
 0x220   :  { %v1443_v25 = vmax.f32 %v1370_v24, 0.0  ;;  %v1284_v56 = vadd.f32 %v1283_v49, %v2939_v42 }
 0x221   :  { %v1442_v26 = vmax.f32 %v1192_v4, 0.0 }
 0x222   :  { %v1699_v14 = vmul.f32 %v1586_v1, %v1443_v25  ;;  %v1194_v3 = vpop.f32.mrf.mxu3 }
 0x223   :  { %v1698_v43 = vmul.f32 %v1586_v1, %v1442_v26 }
 0x224   :  { %v1783_v39 = vadd.f32 %v1782_v34, %v1699_v14  ;;  %v1105_v23 = vpop.f32.mrf.mxu2 }
 0x225   :  { %v1746_v15 = vadd.f32 %v1745_v29, %v1698_v43  ;;  %v1106_v41 = vadd.f32 %v1105_v23, %v2939_v42  ;;  %v1372_v10 = vpop.f32.mrf.mxu1 }
 0x226   :  { %v1373_v44 = vadd.f32 %v1372_v10, %v1284_v56 }
 0x227   :  { %v1195_v33 = vadd.f32 %v1194_v3, %v1106_v41  ;;  %v1285_v46 = vpop.f32.mrf.mxu0  ;;  %v1606_v41 = vpop.permute.xlu2 %1605 }
 0x228   :  { %v1445_v60 = vmax.f32 %v1373_v44, 0.0  ;;  %v1286_v48 = vadd.f32 %v1285_v46, %v2943_v2 }
 0x229   :  { %v1444_v16 = vmax.f32 %v1195_v33, 0.0 }
 0x22a   :  { %v1701_v62 = vmul.f32 %v1591_v13, %v1445_v60  ;;  %v1196_v35 = vpop.f32.mrf.mxu3 }
 0x22b   :  { %v1700_v8 = vmul.f32 %v1591_v13, %v1444_v16 }
 0x22c   :  { %v1784_v40 = vadd.f32 %v1783_v39, %v1701_v62  ;;  %v1107_v52 = vpop.f32.mrf.mxu2 }
 0x22d   :  { %v1747_v57 = vadd.f32 %v1746_v15, %v1700_v8  ;;  %v1108_v17 = vadd.f32 %v1107_v52, %v2943_v2  ;;  %v1374_v18 = vpop.f32.mrf.mxu1 }
 0x22e   :  { %v1375_v7 = vadd.f32 %v1374_v18, %v1286_v48 }
 0x22f   :  { %v1197_v42 = vadd.f32 %v1196_v35, %v1108_v17  ;;  %v1288_v9 = vpop.f32.mrf.mxu0 }
 0x230   :  { %v1447_v0 = vmax.f32 %v1375_v7, 0.0  ;;  %v1289_v19 = vadd.f32 %v1288_v9, %v2941_v54 }
 0x231   :  { %v1446_v63 = vmax.f32 %v1197_v42, 0.0 }
 0x232   :  { %v1703_v53 = vmul.f32 %v1596_v11, %v1447_v0  ;;  %v1199_v37 = vpop.f32.mrf.mxu3 }
 0x233   :  { %v1702_v28 = vmul.f32 %v1596_v11, %v1446_v63 }
 0x234   :  { %v1785_v6 = vadd.f32 %v1784_v40, %v1703_v53  ;;  %v1110_v21 = vpop.f32.mrf.mxu2 }
 0x235   :  { %v1748_v38 = vadd.f32 %v1747_v57, %v1702_v28  ;;  %v1111_v34 = vadd.f32 %v1110_v21, %v2941_v54  ;;  %v1377_v55 = vpop.f32.mrf.mxu1  ;;  %v1611_v57 = vpop.permute.xlu0 %1610 }
 0x236   :  { %v1378_v12 = vadd.f32 %v1377_v55, %v1289_v19 }
 0x237   :  { %v1200_v2 = vadd.f32 %v1199_v37, %v1111_v34  ;;  %v1290_v29 = vpop.f32.mrf.mxu0 }
 0x238   :  { %v1449_v58 = vmax.f32 %v1378_v12, 0.0  ;;  %v1291_v26 = vadd.f32 %v1290_v29, %v2945_v5 }
 0x239   :  { %v1448_v24 = vmax.f32 %v1200_v2, 0.0 }
 0x23a   :  { %v1705_v4 = vmul.f32 %v1601_v61, %v1449_v58  ;;  %v1201_v49 = vpop.f32.mrf.mxu3 }
 0x23b   :  { %v1704_v25 = vmul.f32 %v1601_v61, %v1448_v24 }
 0x23c   :  { %v1786_v1 = vadd.f32 %v1785_v6, %v1705_v4  ;;  %v1112_v14 = vpop.f32.mrf.mxu2 }
 0x23d   :  { %v1749_v3 = vadd.f32 %v1748_v38, %v1704_v25  ;;  %v1113_v43 = vadd.f32 %v1112_v14, %v2945_v5  ;;  %v1379_v39 = vpop.f32.mrf.mxu1 }
 0x23e   :  { %v1380_v56 = vadd.f32 %v1379_v39, %v1291_v26 }
 0x23f   :  { %v1202_v54 = vadd.f32 %v1201_v49, %v1113_v43  ;;  %v1293_v23 = vpop.f32.mrf.mxu0 }
 0x240   :  { %v1451_v15 = vmax.f32 %v1380_v56, 0.0  ;;  %v1294_v13 = vadd.f32 %v1293_v23, %v2955_v50 }
 0x241   :  { %v1450_v10 = vmax.f32 %v1202_v54, 0.0  ;;  %v1616_v54 = vpop.permute.xlu1 %1615 }
 0x242   :  { %v1707_v44 = vmul.f32 %v1606_v41, %v1451_v15  ;;  %v1204_v33 = vpop.f32.mrf.mxu3 }
 0x243   :  { %v1706_v46 = vmul.f32 %v1606_v41, %v1450_v10 }
 0x244   :  { %v1787_v60 = vadd.f32 %v1786_v1, %v1707_v44  ;;  %v1115_v16 = vpop.f32.mrf.mxu2 }
 0x245   :  { %v1750_v62 = vadd.f32 %v1749_v3, %v1706_v46  ;;  %v1116_v35 = vadd.f32 %v1115_v16, %v2955_v50  ;;  %v1382_v8 = vpop.f32.mrf.mxu1 }
 0x246   :  { %v1383_v40 = vadd.f32 %v1382_v8, %v1294_v13 }
 0x247   :  { %v1205_v5 = vadd.f32 %v1204_v33, %v1116_v35  ;;  %v1295_v48 = vpop.f32.mrf.mxu0 }
 0x248   :  { %v1453_v52 = vmax.f32 %v1383_v40, 0.0  ;;  %v1296_v56 = vadd.f32 %v1295_v48, %v2947_v31 }
 0x249   :  { %v1452_v17 = vmax.f32 %v1205_v5, 0.0 }
 0x24a   :  { %v1709_v18 = vmul.f32 %v1611_v57, %v1453_v52  ;;  %v1206_v7 = vpop.f32.mrf.mxu3  ;;  %v1626_v52 = vpop.permute.xlu0 %1625 }
 0x24b   :  { %v1708_v42 = vmul.f32 %v1611_v57, %v1452_v17 }
 0x24c   :  { %v3121_v9 = vadd.f32 %v1787_v60, %v1709_v18  ;;  %v1117_v0 = vpop.f32.mrf.mxu2  ;;  %v1621_v60 = vpop.permute.xlu2 %1620 }
 0x24d   :  { %v3123_v11 = vadd.f32 %v1750_v62, %v1708_v42  ;;  %v1384_v63 = vpop.f32.mrf.mxu1  ;;  %v1118_v43 = vadd.f32 %v1117_v0, %v2947_v31  ;;  %v1631_v0 = vpop.permute.xlu1 %1630 }
 0x24e   :  { %v1385_v15 = vadd.f32 %v1384_v63, %v1296_v56 }
 0x24f   :  { %v1298_v53 = vpop.f32.mrf.mxu0  ;;  %v1207_v44 = vadd.f32 %v1206_v7, %v1118_v43 }
 0x250   :  { %v1299_v41 = vadd.f32 %v1298_v53, %v2963_v59  ;;  %v1455_v62 = vmax.f32 %v1385_v15, 0.0 }
 0x251   :  { %v1454_v31 = vmax.f32 %v1207_v44, 0.0 }
 0x252   :  { %v1209_v37 = vpop.f32.mrf.mxu3  ;;  %v1711_v18 = vmul.f32 %v1616_v54, %v1455_v62 }
 0x253   :  { %v1710_v63 = vmul.f32 %v1616_v54, %v1454_v31 }
 0x254   :  { %v1120_v28 = vpop.f32.mrf.mxu2  ;;  %v1636_v54 = vpop.permute.xlu2 %1635 }
 0x255   :  { %v1387_v50 = vpop.f32.mrf.mxu1  ;;  %v1121_v10 = vadd.f32 %v1120_v28, %v2963_v59  ;;  %v1752_v15 = vadd.f32 %v3123_v11, %v1710_v63  ;;  %v1646_v31 = vpop.permute.xlu1 %1645 }
 0x256   :  { %v1388_v33 = vadd.f32 %v1387_v50, %v1299_v41 }
 0x257   :  { %v1300_v6 = vpop.f32.mrf.mxu0  ;;  %v1210_v35 = vadd.f32 %v1209_v37, %v1121_v10 }
 0x258   :  { %v1301_v13 = vadd.f32 %v1300_v6, %v2967_v45  ;;  %v1457_v48 = vmax.f32 %v1388_v33, 0.0 }
 0x259   :  { %v1456_v7 = vmax.f32 %v1210_v35, 0.0 }
 0x25a   :  { %v1211_v19 = vpop.f32.mrf.mxu3  ;;  %v1713_v37 = vmul.f32 %v1621_v60, %v1457_v48 }
 0x25b   :  { %v1712_v43 = vmul.f32 %v1621_v60, %v1456_v7 }
 0x25c   :  { %v1122_v21 = vpop.f32.mrf.mxu2 }
 0x25d   :  { %v1389_v38 = vpop.f32.mrf.mxu1  ;;  %v1123_v16 = vadd.f32 %v1122_v21, %v2967_v45 }
 0x25e   :  { %v1390_v40 = vadd.f32 %v1389_v38, %v1301_v13 }
 0x25f   :  { %v1303_v34 = vpop.f32.mrf.mxu0  ;;  %v1212_v57 = vadd.f32 %v1211_v19, %v1123_v16 }
 0x260   :  { %v1304_v42 = vadd.f32 %v1303_v34, %v2965_v51  ;;  %v1459_v53 = vmax.f32 %v1390_v40, 0.0 }
 0x261   :  { %v1458_v21 = vmax.f32 %v1212_v57, 0.0 }
 0x262   :  { %v1214_v55 = vpop.f32.mrf.mxu3 }
 0x263   :  { %v1714_v44 = vmul.f32 %v1626_v52, %v1458_v21 }
 0x264   :  { %v1125_v12 = vpop.f32.mrf.mxu2 }
 0x265   :  { %v1392_v2 = vpop.f32.mrf.mxu1  ;;  %v1126_v59 = vadd.f32 %v1125_v12, %v2965_v51  ;;  %v1789_v12 = vadd.f32 %v3121_v9, %v1711_v18 }
 0x266   :  { %v1393_v28 = vadd.f32 %v1392_v2, %v1304_v42 }
 0x267   :  { %v1305_v29 = vpop.f32.mrf.mxu0  ;;  %v1215_v38 = vadd.f32 %v1214_v55, %v1126_v59 }
 0x268   :  { %v1306_v50 = vadd.f32 %v1305_v29, %v2981_v27  ;;  %v1790_v29 = vadd.f32 %v1789_v12, %v1713_v37  ;;  %v1461_v10 = vmax.f32 %v1393_v28, 0.0 }
 0x269   :  { %v1460_v9 = vmax.f32 %v1215_v38, 0.0 }
 0x26a   :  { %v1216_v58 = vpop.f32.mrf.mxu3  ;;  %v1717_v35 = vmul.f32 %v1631_v0, %v1461_v10 }
 0x26b   :  { %v1716_v40 = vmul.f32 %v1631_v0, %v1460_v9 }
 0x26c   :  { %v1127_v61 = vpop.f32.mrf.mxu2 }
 0x26d   :  { %v1394_v24 = vpop.f32.mrf.mxu1  ;;  %v1128_v45 = vadd.f32 %v1127_v61, %v2981_v27  ;;  %v1715_v61 = vmul.f32 %v1626_v52, %v1459_v53 }
 0x26e   :  { %v1395_v56 = vadd.f32 %v1394_v24, %v1306_v50 }
 0x26f   :  { %v1308_v4 = vpop.f32.mrf.mxu0  ;;  %v1217_v41 = vadd.f32 %v1216_v58, %v1128_v45  ;;  %v1641_v58 = vpop.permute.xlu0 %1640  ;;  %v1791_v16 = vadd.f32 %v1790_v29, %v1715_v61 }
 0x270   :  { %v1309_v51 = vadd.f32 %v1308_v4, %v2985_v32  ;;  %v1753_v4 = vadd.f32 %v1752_v15, %v1712_v43  ;;  %v1463_v60 = vmax.f32 %v1395_v56, 0.0  ;;  %v1651_v45 = vpop.permute.xlu2 %1650 }
 0x272   :  { %v1219_v49 = vpop.f32.mrf.mxu3  ;;  %v1719_v52 = vmul.f32 %v1636_v54, %v1463_v60 }
 0x274   :  { %v1130_v25 = vpop.f32.mrf.mxu2 }
 0x275   :  { %v1397_v1 = vpop.f32.mrf.mxu1  ;;  %v1131_v19 = vadd.f32 %v1130_v25, %v2985_v32 }
 0x276   :  { %v1398_v55 = vadd.f32 %v1397_v1, %v1309_v51 }
 0x277   :  { %v1310_v26 = vpop.f32.mrf.mxu0  ;;  %v1220_v33 = vadd.f32 %v1219_v49, %v1131_v19 }
 0x278   :  { %v1311_v25 = vadd.f32 %v1310_v26, %v2983_v22 }
 0x279   :  { %v1464_v48 = vmax.f32 %v1220_v33, 0.0 }
 0x27a   :  { %v3125_v14 = vpop.f32.mrf.mxu3 }
 0x27c   :  { %v1132_v3 = vpop.f32.mrf.mxu2 }
 0x27d   :  { %v1399_v39 = vpop.f32.mrf.mxu1  ;;  %v1133_v2 = vadd.f32 %v1132_v3, %v2983_v22  ;;  %v1462_v3 = vmax.f32 %v1217_v41, 0.0  ;;  %v1465_v22 = vmax.f32 %v1398_v55, 0.0  ;;  %v1661_v55 = vpop.permute.xlu1 %1660 }
 0x27e   :  { %v1400_v13 = vadd.f32 %v1399_v39, %v1311_v25 }
 0x27f   :  { %v1313_v23 = vpop.f32.mrf.mxu0  ;;  %v1222_v62 = vadd.f32 %v3125_v14, %v1133_v2  ;;  %v1718_v18 = vmul.f32 %v1636_v54, %v1462_v3  ;;  %v1656_v54 = vpop.permute.xlu0 %1655 }
 0x280   :  { %v1314_v11 = vadd.f32 %v1313_v23, %v2988_v47 }
 0x281   :  { %v1466_v7 = vmax.f32 %v1222_v62, 0.0  ;;  %v1666_v62 = vpop.permute.xlu2 %1665 }
 0x282   :  { %v3131_v46 = vpop.f32.mrf.mxu3 }
 0x283   :  { %v1722_v43 = vmul.f32 %v1646_v31, %v1466_v7 }
 0x284   :  { %v1135_v8 = vpop.f32.mrf.mxu2 }
 0x285   :  { %v1402_v5 = vpop.f32.mrf.mxu1  ;;  %v1136_v24 = vadd.f32 %v1135_v8, %v2988_v47  ;;  %v1754_v8 = vadd.f32 %v1753_v4, %v1714_v44  ;;  %v1467_v47 = vmax.f32 %v1400_v13, 0.0 }
 0x286   :  { %v1403_v26 = vadd.f32 %v1402_v5, %v1314_v11 }
 0x287   :  { %v1315_v17 = vpop.f32.mrf.mxu0  ;;  %v1225_v39 = vadd.f32 %v3131_v46, %v1136_v24  ;;  %v1755_v37 = vadd.f32 %v1754_v8, %v1716_v40  ;;  %v1720_v46 = vmul.f32 %v1641_v58, %v1464_v48  ;;  %v1723_v38 = vmul.f32 %v1646_v31, %v1467_v47 }
 0x288   :  { %v1316_v49 = vadd.f32 %v1315_v17, %v2993_v20  ;;  %v1721_v17 = vmul.f32 %v1641_v58, %v1465_v22  ;;  %v1469_v53 = vmax.f32 %v1403_v26, 0.0 }
 0x289   :  { %v1468_v28 = vmax.f32 %v1225_v39, 0.0  ;;  %v1756_v12 = vadd.f32 %v1755_v37, %v1718_v18  ;;  %v1807_v18 = vstv %s3167_s6 }
 0x28a   :  { %v1226_v6 = vpop.f32.mrf.mxu3 }
 0x28b   :  { %v1757_v15 = vadd.f32 %v1756_v12, %v1720_v46  ;;  %v1724_v61 = vmul.f32 %v1651_v45, %v1468_v28 }
 0x28c   :  { %v1137_v34 = vpop.f32.mrf.mxu2 }
 0x28d   :  { %v1404_v27 = vpop.f32.mrf.mxu1  ;;  %v1138_v1 = vadd.f32 %v1137_v34, %v2993_v20  ;;  %v1792_v20 = vadd.f32 %v1791_v16, %v1717_v35  ;;  %v1725_v34 = vmul.f32 %v1651_v45, %v1469_v53  ;;  %v1758_v25 = vadd.f32 %v1757_v15, %v1722_v43 }
 0x28e   :  { %v1405_v23 = vadd.f32 %v1404_v27, %v1316_v49 }
 0x28f   :  { %v1318_v32 = vpop.f32.mrf.mxu0  ;;  %v1227_v42 = vadd.f32 %v1226_v6, %v1138_v1  ;;  %v1793_v21 = vadd.f32 %v1792_v20, %v1719_v52  ;;  %v1759_v13 = vadd.f32 %v1758_v25, %v1724_v61 }
 0x290   :  { %v1319_v57 = vadd.f32 %v1318_v32, %v2991_v30  ;;  %v1471_v19 = vmax.f32 %v1405_v23, 0.0 }
 0x291   :  { %v1470_v56 = vmax.f32 %v1227_v42, 0.0  ;;  %v1794_v6 = vadd.f32 %v1793_v21, %v1721_v17 }
 0x292   :  { %v1229_v14 = vpop.f32.mrf.mxu3  ;;  %v1727_v27 = vmul.f32 %v1656_v54, %v1471_v19 }
 0x293   :  { %v1795_v2 = vadd.f32 %v1794_v6, %v1723_v38  ;;  %v1726_v44 = vmul.f32 %v1656_v54, %v1470_v56 }
 0x294   :  { %v1140_v59 = vpop.f32.mrf.mxu2 }
 0x295   :  { %v1141_v5 = vadd.f32 %v1140_v59, %v2991_v30  ;;  %v1407_v63 = vpop.f32.mrf.mxu1  ;;  %v1796_v24 = vadd.f32 %v1795_v2, %v1725_v34  ;;  %v1760_v1 = vadd.f32 %v1759_v13, %v1726_v44 }
 0x296   :  { %v1408_v0 = vadd.f32 %v1407_v63, %v1319_v57 }
 0x297   :  { %v1230_v50 = vadd.f32 %v1229_v14, %v1141_v5  ;;  %v1320_v51 = vpop.f32.mrf.mxu0  ;;  %v1797_v16 = vadd.f32 %v1796_v24, %v1727_v27  ;;  %v1816_v5 = vlaneseq }
 0x298   :  { %v1473_v30 = vmax.f32 %v1408_v0, 0.0  ;;  %v1321_v29 = vadd.f32 %v1320_v51, %v3009_v36 }
 0x299   :  { %v1472_v41 = vmax.f32 %v1230_v50, 0.0  ;;  %vm1818_vm2 = vcmp.lt.s32.totalorder %v1816_v5, 256 }
 0x29a   :  { %v1729_v32 = vmul.f32 %v1661_v55, %v1473_v30  ;;  %v1231_v60 = vpop.f32.mrf.mxu3 }
 0x29b   :  { %v1728_v11 = vmul.f32 %v1661_v55, %v1472_v41 }
 0x29c   :  { %v1142_v10 = vpop.f32.mrf.mxu2  ;;  %v1798_v22 = vadd.f32 %v1797_v16, %v1729_v32 }
 0x29d   :  { %v1143_v9 = vadd.f32 %v1142_v10, %v3009_v36  ;;  %v1409_v33 = vpop.f32.mrf.mxu1  ;;  %v1761_v49 = vadd.f32 %v1760_v1, %v1728_v11 }
 0x29e   :  { %v1410_v4 = vadd.f32 %v1409_v33, %v1321_v29 }
 0x29f   :  { %v1232_v58 = vadd.f32 %v1231_v60, %v1143_v9 }
 0x2a0   :  { %v1475_v3 = vmax.f32 %v1410_v4, 0.0 }
 0x2a1   :  { %v1474_v35 = vmax.f32 %v1232_v58, 0.0 }
 0x2a2   :  { %v1731_v26 = vmul.f32 %v1666_v62, %v1475_v3 }
 0x2a3   :  { %v1730_v31 = vmul.f32 %v1666_v62, %v1474_v35 }
 0x2a4   :  { %v1799_v8 = vadd.f32 %v1798_v22, %v1731_v26 }
 0x2a5   :  { %v1762_v40 = vadd.f32 %v1761_v49, %v1730_v31 }
 0x2a6   :  { %v1800_v36 = vrot.slane %v1799_v8, 4 }
 0x2a7   :  { %v1763_v48 = vrot.slane %v1762_v40, 4 }
 0x2a8   :  { %v1801_v39 = vadd.f32 %v1800_v36, %v1799_v8 }
 0x2a9   :  { %v1764_v52 = vadd.f32 %v1763_v48, %v1762_v40 }
 0x2aa   :  { %v1802_v47 = vrot.slane %v1801_v39, 2 }
 0x2ab   :  { %v1765_v23 = vrot.slane %v1764_v52, 2 }
 0x2ac   :  { %v1803_v57 = vadd.f32 %v1802_v47, %v1801_v39 }
 0x2ad   :  { %v1766_v59 = vadd.f32 %v1765_v23, %v1764_v52 }
 0x2ae   :  { %v1804_v14 = vrot.slane %v1803_v57, 1 }
 0x2af   :  { %v1767_v7 = vrot.slane %v1766_v59, 1 }
 0x2b0   :  { %v1805_v42 = vadd.f32 %v1804_v14, %v1803_v57 }
 0x2b1   :  { %v1768_v63 = vadd.f32 %v1767_v7, %v1766_v59 }
 0x2b2   :  { %v1809_v20 = vadd.f32 %v1807_v18, %v1805_v42 }
 0x2b3   :  { %v1808_v17 = vadd.f32 %v1807_v18, %v1768_v63 }
 0x2b4   :  { %v1812_v53 = vrot.slane %v1809_v20, 7 }
 0x2b6   :  { %v1814_v0 = vsel %vm1813_vm1, %v1808_v17, %v1812_v53 }
 0x2b7   :  { %1820 = vst.msk [vmem:[%s3168_s7] sm:$0x3] %vm1818_vm2, %v1814_v0 }

</bundles_post_ra>
